<compile_context>
chip_gen: v7x
topology: tpu7x:2x2x1
jax: 0.10.0
libtpu: 0.0.40
codegen_flags: <defaults>
</compile_context>

<pallas_src>
import jax
import jax.numpy as jnp
from jax.experimental import pallas as pl
from jax.experimental.pallas import tpu as pltpu

ALPHA = 10.0        # alpha
EPS = 1e-08         # eps
SIGMA_MIN = 0.0001  # sigma_


def _round_up(x, m):
    return ((x + m - 1) // m) * m


def _pick_tile(n_pad, cap):
    """Largest multiple of 128 that divides n_pad and is <= cap (lane-dense tiles)."""
    best = 128
    m = 128
    lim = min(n_pad, cap)
    while m <= lim:
        if n_pad % m == 0:
            best = m
        m += 128
    return best


# ---------------------------------------------------------------------------
# Fused kernel: gram (MXU) -> exp (EUP) -> stacked [kx, ke, kx*ke] tile
# ---------------------------------------------------------------------------
def _fused_gram_kernel(scal_ref, xi_ref, xj_ref, ei_ref, ej_ref,
                       nxi_ref, nxj_ref, nei_ref, nej_ref, kout_ref):
    # scal = [2/s_x, 2/s_e]; norms are pre-scaled by -1/s in glue, so
    #   exp(-(|xi|^2 + |xj|^2 - 2 xi.xj)/s) == exp((2/s)*(xi.xj) + nxi + nxj)
    cx = scal_ref[0, 0]
    ce = scal_ref[0, 1]

    xi = xi_ref[...]                                   # (TM, DX) f32, row block i
    xj = xj_ref[...]                                   # (TN, DX) f32, row block j
    ei = ei_ref[...]                                   # (TM, DE) f32
    ej = ej_ref[...]                                   # (TN, DE) f32

    gx = jnp.dot(xi, xj.T, preferred_element_type=jnp.float32)   # MXU
    ge = jnp.dot(ei, ej.T, preferred_element_type=jnp.float32)   # MXU

    kx = jnp.exp(cx * gx + nxi_ref[...] + nxj_ref[...])          # (TM,TN) EUP exp
    ke = jnp.exp(ce * ge + nei_ref[...] + nej_ref[...])

    kout_ref[0, :, :] = kx
    kout_ref[1, :, :] = ke
    kout_ref[2, :, :] = kx * ke


def fused_grams_stacked(X, E, s_x, s_e):
    """Returns stacked (unnormalized) gram matrices [kx, ke, kx*ke], shape (3, N, N)."""
    n, dx_dim = X.shape
    _, de_dim = E.shape

    # 128-granular padding (lane-dense); tiles are divisors of n_pad.
    n_pad = max(128, _round_up(n, 128))
    tm = _pick_tile(n_pad, 512)
    tn = _pick_tile(n_pad, 1024)

    Xp = jnp.zeros((n_pad, dx_dim), jnp.float32).at[:n, :].set(X.astype(jnp.float32))
    Ep = jnp.zeros((n_pad, de_dim), jnp.float32).at[:n, :].set(E.astype(jnp.float32))

    inv_sx = (1.0 / s_x).astype(jnp.float32)
    inv_se = (1.0 / s_e).astype(jnp.float32)

    # Precomputed, pre-scaled row norms (review item: no in-kernel reductions/transposes).
    nx = jnp.sum(Xp * Xp, axis=-1)                    # (n_pad,)
    ne = jnp.sum(Ep * Ep, axis=-1)
    nx_col = (-inv_sx * nx)[:, None]                  # (n_pad, 1)  i-side
    nx_row = (-inv_sx * nx)[None, :]                  # (1, n_pad)  j-side
    ne_col = (-inv_se * ne)[:, None]
    ne_row = (-inv_se * ne)[None, :]

    scal = jnp.stack([2.0 * inv_sx, 2.0 * inv_se]).reshape(1, 2).astype(jnp.float32)

    grid = (n_pad // tm, n_pad // tn)
    kout = pl.pallas_call(
        _fused_gram_kernel,
        out_shape=jax.ShapeDtypeStruct((3, n_pad, n_pad), jnp.float32),
        grid=grid,
        in_specs=[
            pl.BlockSpec(memory_space=pltpu.MemorySpace.SMEM),   # [2/s_x, 2/s_e]
            pl.BlockSpec((tm, dx_dim), lambda i, j: (i, 0)),     # X row block i
            pl.BlockSpec((tn, dx_dim), lambda i, j: (j, 0)),     # X row block j
            pl.BlockSpec((tm, de_dim), lambda i, j: (i, 0)),     # E row block i
            pl.BlockSpec((tn, de_dim), lambda i, j: (j, 0)),     # E row block j
            pl.BlockSpec((tm, 1), lambda i, j: (i, 0)),          # -|x_i|^2 / s_x
            pl.BlockSpec((1, tn), lambda i, j: (0, j)),          # -|x_j|^2 / s_x
            pl.BlockSpec((tm, 1), lambda i, j: (i, 0)),          # -|e_i|^2 / s_e
            pl.BlockSpec((1, tn), lambda i, j: (0, j)),          # -|e_j|^2 / s_e
        ],
        out_specs=pl.BlockSpec((3, tm, tn), lambda i, j: (0, i, j)),  # stacked slab
        compiler_params=pltpu.CompilerParams(
            dimension_semantics=("parallel", "parallel"),
            vmem_limit_bytes=48 * 1024 * 1024,   # safe on v7x (64 MiB physical)
        ),
    )(scal, Xp, Xp, Ep, Ep, nx_col, nx_row, ne_col, ne_row)

    # Padded rows/cols are garbage-but-unused: one slice before the eigen stage.
    return kout[:, :n, :n]


# ---------------------------------------------------------------------------
# JAX glue (tiny shapes): sigma from a thin distance slab, batched eigen stage
# ---------------------------------------------------------------------------
def _sigma_from_thin_slab(Z):
    """calculate_sigma: mean of the first min(10, N) columns of the Euclidean
    distance matrix, clamped at sigma_.  The reference slices k[:, :10] first and
    only then sorts each row, which is mean-invariant, so the sort is dropped."""
    n = Z.shape[0]
    m = min(10, n)
    z = Z.astype(jnp.float32)
    zh = z[:m]
    nz = jnp.sum(z * z, axis=-1, keepdims=True)          # (N, 1)
    nh = jnp.sum(zh * zh, axis=-1, keepdims=True)        # (m, 1)
    d = -2.0 * (z @ zh.T) + nz + nh.T                    # (N, m) squared distances
    eucl = jnp.sqrt(jnp.maximum(d, 0.0))
    # squareform(pdist) has an exact-zero diagonal
    rows = jnp.arange(n)[:, None]
    cols = jnp.arange(m)[None, :]
    eucl = jnp.where(rows == cols, 0.0, eucl)
    sigma = jnp.mean(eucl)
    return jnp.maximum(sigma, SIGMA_MIN)


def _renyi_entropies(ks, n):
    """ks: stacked (3, N, N) grams [kx, ke, kxe] -> (Hx, He, Hxe)."""
    # trace(K) of an RBF gram is exactly N (zero self-distances); using the analytic
    # value avoids re-reading 3 N^2 matrices from HBM (differs from the numeric f32
    # trace only at ~1e-6 relative).
    trace = jnp.float32(n)
    # TODO(synk): eigendecomposition has no Pallas equivalent; one batched eigvalsh.
    eigv = jnp.abs(jnp.linalg.eigvalsh(ks))              # (3, N)
    eigv = eigv / (trace + EPS)       # eigvals(K/c) == eigvals(K)/c (exact)
    return (1.0 / (1.0 - ALPHA)) * jnp.log2(jnp.sum(eigv ** ALPHA, axis=-1))  # (3,)


def mi_loss(X, E):
    """Forward pass of MILoss: mutual information I(X; E)."""
    if X.ndim == 1:
        X = X[:, None]
    if E.ndim == 1:
        E = E[:, None]
    X = X.astype(jnp.float32)
    E = E.astype(jnp.float32)

    # Bandwidth convention matches the reference: exp(-d / sigma^2), s = sigma^2.
    s_x = _sigma_from_thin_slab(X) ** 2
    s_e = _sigma_from_thin_slab(E) ** 2

    ks = fused_grams_stacked(X, E, s_x, s_e)   # Pallas: fused sqdist -> gram -> joint

    h = _renyi_entropies(ks, X.shape[0])
    return h[0] + h[1] - h[2]


if __name__ == "__main__":
    key = jax.random.PRNGKey(0)
    k1, k2 = jax.random.split(key)
    N, DX, DE = 16, 32, 8
    X = jax.random.normal(k1, (N, DX), dtype=jnp.float32)
    E = jax.random.normal(k2, (N, DE), dtype=jnp.float32)

    mi = jax.jit(mi_loss)(X, E)
    jax.block_until_ready(mi)
    assert mi.shape == () and bool(jnp.isfinite(mi))
    print("KERNEL_OK")
</pallas_src>

<mosaic_0001>
module attributes {stable_mosaic.version = 11 : i64} {
  func.func @_fused_gram_kernel(%arg0: i32, %arg1: i32, %arg2: memref<1x2xf32, #tpu.memory_space<smem>>, %arg3: memref<128x32xf32, #tpu.memory_space<vmem>>, %arg4: memref<128x32xf32, #tpu.memory_space<vmem>>, %arg5: memref<128x8xf32, #tpu.memory_space<vmem>>, %arg6: memref<128x8xf32, #tpu.memory_space<vmem>>, %arg7: memref<128x1xf32, #tpu.memory_space<vmem>>, %arg8: memref<1x128xf32, #tpu.memory_space<vmem>>, %arg9: memref<128x1xf32, #tpu.memory_space<vmem>>, %arg10: memref<1x128xf32, #tpu.memory_space<vmem>>, %arg11: memref<3x128x128xf32, #tpu.memory_space<vmem>>) attributes {dimension_semantics = [#tpu.dimension_semantics<parallel>, #tpu.dimension_semantics<parallel>], iteration_bounds = array<i64: 1, 1>, scalar_prefetch = 0 : i64, scratch_operands = 0 : i64, tpu.core_type = #tpu.core_type<tc>, window_params = [{transform_indices = @transform_0, window_bounds = array<i64: 1, 2>}, {transform_indices = @transform_1, window_bounds = array<i64: 128, 32>}, {transform_indices = @transform_2, window_bounds = array<i64: 128, 32>}, {transform_indices = @transform_3, window_bounds = array<i64: 128, 8>}, {transform_indices = @transform_4, window_bounds = array<i64: 128, 8>}, {transform_indices = @transform_5, window_bounds = array<i64: 128, 1>}, {transform_indices = @transform_6, window_bounds = array<i64: 1, 128>}, {transform_indices = @transform_7, window_bounds = array<i64: 128, 1>}, {transform_indices = @transform_8, window_bounds = array<i64: 1, 128>}, {transform_indices = @transform_9, window_bounds = array<i64: 3, 128, 128>}]} {
    %c0 = arith.constant 0 : index
    %c0_0 = arith.constant 0 : index
    %0 = memref.load %arg2[%c0, %c0_0] : memref<1x2xf32, #tpu.memory_space<smem>>
    %c0_1 = arith.constant 0 : index
    %c1 = arith.constant 1 : index
    %1 = memref.load %arg2[%c0_1, %c1] : memref<1x2xf32, #tpu.memory_space<smem>>
    %c0_2 = arith.constant 0 : index
    %c0_3 = arith.constant 0 : index
    %2 = vector.load %arg3[%c0_2, %c0_3] : memref<128x32xf32, #tpu.memory_space<vmem>>, vector<128x32xf32>
    %c0_4 = arith.constant 0 : index
    %c0_5 = arith.constant 0 : index
    %3 = vector.load %arg4[%c0_4, %c0_5] : memref<128x32xf32, #tpu.memory_space<vmem>>, vector<128x32xf32>
    %c0_6 = arith.constant 0 : index
    %c0_7 = arith.constant 0 : index
    %4 = vector.load %arg5[%c0_6, %c0_7] : memref<128x8xf32, #tpu.memory_space<vmem>>, vector<128x8xf32>
    %c0_8 = arith.constant 0 : index
    %c0_9 = arith.constant 0 : index
    %5 = vector.load %arg6[%c0_8, %c0_9] : memref<128x8xf32, #tpu.memory_space<vmem>>, vector<128x8xf32>
    %6 = tpu.transpose %3, [1, 0] : vector<128x32xf32> -> vector<32x128xf32>
    %cst = arith.constant dense<0.000000e+00> : vector<128x128xf32>
    %7 = tpu.matmul %2, %6, %cst {dimension_numbers = #tpu.dot_dimension_numbers<[1], [0], [0], [1], [0, 0, 1, 1], [], []>} : vector<128x32xf32>, vector<32x128xf32>, vector<128x128xf32> -> vector<128x128xf32>
    %8 = tpu.transpose %5, [1, 0] : vector<128x8xf32> -> vector<8x128xf32>
    %cst_10 = arith.constant dense<0.000000e+00> : vector<128x128xf32>
    %9 = tpu.matmul %4, %8, %cst_10 {dimension_numbers = #tpu.dot_dimension_numbers<[1], [0], [0], [1], [0, 0, 1, 1], [], []>} : vector<128x8xf32>, vector<8x128xf32>, vector<128x128xf32> -> vector<128x128xf32>
    %10 = vector.broadcast %0 : f32 to vector<128x128xf32>
    %11 = arith.mulf %10, %7 : vector<128x128xf32>
    %c0_11 = arith.constant 0 : index
    %c0_12 = arith.constant 0 : index
    %12 = vector.load %arg7[%c0_11, %c0_12] : memref<128x1xf32, #tpu.memory_space<vmem>>, vector<128x1xf32>
    %13 = vector.broadcast %12 : vector<128x1xf32> to vector<128x128xf32>
    %14 = arith.addf %11, %13 : vector<128x128xf32>
    %c0_13 = arith.constant 0 : index
    %c0_14 = arith.constant 0 : index
    %15 = vector.load %arg8[%c0_13, %c0_14] : memref<1x128xf32, #tpu.memory_space<vmem>>, vector<1x128xf32>
    %16 = vector.broadcast %15 : vector<1x128xf32> to vector<128x128xf32>
    %17 = arith.addf %14, %16 : vector<128x128xf32>
    %18 = math.exp %17 : vector<128x128xf32>
    %19 = vector.broadcast %1 : f32 to vector<128x128xf32>
    %20 = arith.mulf %19, %9 : vector<128x128xf32>
    %c0_15 = arith.constant 0 : index
    %c0_16 = arith.constant 0 : index
    %21 = vector.load %arg9[%c0_15, %c0_16] : memref<128x1xf32, #tpu.memory_space<vmem>>, vector<128x1xf32>
    %22 = vector.broadcast %21 : vector<128x1xf32> to vector<128x128xf32>
    %23 = arith.addf %20, %22 : vector<128x128xf32>
    %c0_17 = arith.constant 0 : index
    %c0_18 = arith.constant 0 : index
    %24 = vector.load %arg10[%c0_17, %c0_18] : memref<1x128xf32, #tpu.memory_space<vmem>>, vector<1x128xf32>
    %25 = vector.broadcast %24 : vector<1x128xf32> to vector<128x128xf32>
    %26 = arith.addf %23, %25 : vector<128x128xf32>
    %27 = math.exp %26 : vector<128x128xf32>
    %c0_19 = arith.constant 0 : index
    %c0_20 = arith.constant 0 : index
    %c0_21 = arith.constant 0 : index
    %28 = vector.load %arg11[%c0_19, %c0_20, %c0_21] : memref<3x128x128xf32, #tpu.memory_space<vmem>>, vector<1x128x128xf32>
    %29 = vector.shape_cast %28 : vector<1x128x128xf32> to vector<128x128xf32>
    %30 = vector.shape_cast %18 : vector<128x128xf32> to vector<1x128x128xf32>
    tpu.vector_store %arg11[%c0_19, %c0_20, %c0_21], %30 {strides = array<i32>} : memref<3x128x128xf32, #tpu.memory_space<vmem>>, vector<1x128x128xf32>,
    %c1_22 = arith.constant 1 : index
    %c0_23 = arith.constant 0 : index
    %c0_24 = arith.constant 0 : index
    %31 = vector.load %arg11[%c1_22, %c0_23, %c0_24] : memref<3x128x128xf32, #tpu.memory_space<vmem>>, vector<1x128x128xf32>
    %32 = vector.shape_cast %31 : vector<1x128x128xf32> to vector<128x128xf32>
    %33 = vector.shape_cast %27 : vector<128x128xf32> to vector<1x128x128xf32>
    tpu.vector_store %arg11[%c1_22, %c0_23, %c0_24], %33 {strides = array<i32>} : memref<3x128x128xf32, #tpu.memory_space<vmem>>, vector<1x128x128xf32>,
    %34 = arith.mulf %18, %27 : vector<128x128xf32>
    %c2 = arith.constant 2 : index
    %c0_25 = arith.constant 0 : index
    %c0_26 = arith.constant 0 : index
    %35 = vector.load %arg11[%c2, %c0_25, %c0_26] : memref<3x128x128xf32, #tpu.memory_space<vmem>>, vector<1x128x128xf32>
    %36 = vector.shape_cast %35 : vector<1x128x128xf32> to vector<128x128xf32>
    %37 = vector.shape_cast %34 : vector<128x128xf32> to vector<1x128x128xf32>
    tpu.vector_store %arg11[%c2, %c0_25, %c0_26], %37 {strides = array<i32>} : memref<3x128x128xf32, #tpu.memory_space<vmem>>, vector<1x128x128xf32>,
    return
  }
  func.func @transform_0(%arg0: i32, %arg1: i32) -> (i32, i32) {
    %c0_i32 = arith.constant 0 : i32
    %c0_i32_0 = arith.constant 0 : i32
    %c0_i32_1 = arith.constant 0 : i32
    return %c0_i32, %c0_i32_0 : i32, i32
  }
  func.func @transform_1(%arg0: i32, %arg1: i32) -> (i32, i32) {
    %c0_i32 = arith.constant 0 : i32
    %c0_i32_0 = arith.constant 0 : i32
    return %arg0, %c0_i32 : i32, i32
  }
  func.func @transform_2(%arg0: i32, %arg1: i32) -> (i32, i32) {
    %c0_i32 = arith.constant 0 : i32
    %c0_i32_0 = arith.constant 0 : i32
    return %arg1, %c0_i32 : i32, i32
  }
  func.func @transform_3(%arg0: i32, %arg1: i32) -> (i32, i32) {
    %c0_i32 = arith.constant 0 : i32
    %c0_i32_0 = arith.constant 0 : i32
    return %arg0, %c0_i32 : i32, i32
  }
  func.func @transform_4(%arg0: i32, %arg1: i32) -> (i32, i32) {
    %c0_i32 = arith.constant 0 : i32
    %c0_i32_0 = arith.constant 0 : i32
    return %arg1, %c0_i32 : i32, i32
  }
  func.func @transform_5(%arg0: i32, %arg1: i32) -> (i32, i32) {
    %c0_i32 = arith.constant 0 : i32
    %c0_i32_0 = arith.constant 0 : i32
    return %arg0, %c0_i32 : i32, i32
  }
  func.func @transform_6(%arg0: i32, %arg1: i32) -> (i32, i32) {
    %c0_i32 = arith.constant 0 : i32
    %c0_i32_0 = arith.constant 0 : i32
    return %c0_i32, %arg1 : i32, i32
  }
  func.func @transform_7(%arg0: i32, %arg1: i32) -> (i32, i32) {
    %c0_i32 = arith.constant 0 : i32
    %c0_i32_0 = arith.constant 0 : i32
    return %arg0, %c0_i32 : i32, i32
  }
  func.func @transform_8(%arg0: i32, %arg1: i32) -> (i32, i32) {
    %c0_i32 = arith.constant 0 : i32
    %c0_i32_0 = arith.constant 0 : i32
    return %c0_i32, %arg1 : i32, i32
  }
  func.func @transform_9(%arg0: i32, %arg1: i32) -> (i32, i32, i32) {
    %c0_i32 = arith.constant 0 : i32
    %c0_i32_0 = arith.constant 0 : i32
    return %c0_i32, %arg0, %arg1 : i32, i32, i32
  }
}

</mosaic_0001>

<bundles_post_ra>
// kernel: custom-call.3
= control target key start
LH: loop header
LB: loop body
LE: loop exit
PB: predicated region body
PF: predicated region fallthrough
CT: control target
= control target key end

     0   :  { %s2094_s0 = inlined_call_operand.vmem [shape: f32[3,8,8], index: 0, kind: input, shape index: {}]   ;;  %s2095_s1 = inlined_call_operand.vmem [shape: f32[3,8,8], index: 1, kind: input, shape index: {}]   ;;  %s2096_s2 = inlined_call_operand.vmem [shape: f32[3,8,8], index: 2, kind: input, shape index: {}]   ;;  %s2097_s3 = inlined_call_operand.vmem [shape: f32[3,8,8], index: 3, kind: input, shape index: {}]   ;;  %s2098_s4 = inlined_call_operand.vmem [shape: f32[3,8], index: 4, kind: output, shape index: {0}]   ;;  %s2099_s5 = inlined_call_operand.vmem [shape: f32[3,8], index: 5, kind: output, shape index: {1}]   ;;  %s2100_s6 = inlined_call_operand.hbm [shape: f32[3,8,8], index: 6, kind: output, shape index: {2}]   ;;  %s2101_s7 = inlined_call_operand.hbm [shape: f32[3,8,8], index: 7, kind: output, shape index: {3}]   ;;  %s2102_s8 = inlined_call_operand.hbm [shape: f32[3,8,8], index: 8, kind: output, shape index: {4}]   ;;  %s2103_s9 = inlined_call_operand.hbm [shape: f32[3,8,8], index: 9, kind: output, shape index: {5}]  }
   0x1   :  { %2104 = sst [smem:[#allocation32_spill]] %s2094_s0 }
   0x2   :  { %11 = vsyncpa [#allocation9], 0 }
   0x3   :  { %13 = vsyncpa [#allocation9 + $0x1], 0 }
   0x4   :  { %14 = vsyncpa [#allocation11], 0 }
   0x5   :  { %16 = vsyncpa [#allocation11 + $0x1], 0 }
   0x6   :  { %17 = vsyncpa [#allocation14], 0 }
   0x7   :  { %19 = vsyncpa [#allocation14 + $0x1], 0  ;;  %s1723_s30 = smov 0   ;;  %s1725_s10 = smov 0  }
   0x8   :  { %s1727_s11 = smov 0  }
   0x9 LB: > { %s1739_s12 = sadd.s32 4294967295, %s1656_s11   ;;  %s1743_s14 = sadd.s32 1, %s1656_s11   ;;  %s1656_s11 = sphi %s1727_s11, %s2121_s11   ;;  %s1652_s10 = sphi %s1725_s10, %s2120_s10   ;;  %s1648_s30 = sphi %s1723_s30, %s2119_s30  }
   0xa   : > { %s29_s15 = sshrl.u32 %s1656_s11, 3  ;;  %s30_s16 = sshrl.u32 %s1743_s14, 3 }
   0xb   : > { %s34_s17 = sadd.s32 1, %s1652_s10  ;;  %s31_s18 = ssub.s32 %s29_s15, %s30_s16 }
   0xc   : > { %p44_p0 = scmp.ne.s32.totalorder %s1652_s10, %s1648_s30  ;;  %p32_p1 = scmp.eq.s32.totalorder %s31_s18, 0 }
   0xd   : > { %p45_p2 = scmp.eq.s32.totalorder %s1739_s12, 2  ;;  %p1404_p4 = scmp.ge.s32.totalorder %s1656_s11, 3 }
   0xe   : > { %s1752_s19 = scalar_select %p32_p1, %s1652_s10, %s34_s17  }
   0xf   : > { %p1754_p3 = por %p45_p2, %p44_p0  ;;  %95 = sbr.rel (%p1404_p4) target bundleno = 27 (0x1b), region = 16 }
  0x10   : > { %2105 = sst [smem:[#allocation31_spill]] %s1752_s19  ;;  %s97_s21 = sand.u32 (!%p1404_p4), 1, %s1656_s11  }
  0x11   : > { %s1406_s22 = sshll.u32 (!%p1404_p4), %s1656_s11, 3  ;;  %s1405_s23 = sshll.u32 (!%p1404_p4), %s97_s21, 3 }
  0x12   : > { %s2107_s0 = sld [smem:[#allocation32_spill]] (!%p1404_p4)  ;;  %s99_s27 = scalar_lea.vmem (!%p1404_p4), [#allocation0], %s1405_s23 }
  0x13   : > { %s139_s15 = scalar_lea.vmem (!%p1404_p4), %s2095_s1, %s1406_s22  ;;  %s177_s18 = scalar_lea.vmem (!%p1404_p4), %s2096_s2, %s1406_s22 }
  0x14   : > { %v167_v1 = vld [vmem:[%s139_s15] sm:$0xff] (!%p1404_p4)  ;;  %s137_s13 = scalar_lea.vmem (!%p1404_p4), [#allocation1], %s1405_s23  ;;  %s215_s24 = scalar_lea.vmem (!%p1404_p4), %s2097_s3, %s1406_s22 }
  0x15   : > { %168 = vst [vmem:[%s137_s13] sm:$0xff] (!%p1404_p4), %v167_v1  ;;  %v205_v2 = vld [vmem:[%s177_s18] sm:$0xff] (!%p1404_p4)  ;;  %s175_s25 = scalar_lea.vmem (!%p1404_p4), [#allocation2], %s1405_s23 }
  0x16   : > { %206 = vst [vmem:[%s175_s25] sm:$0xff] %v205_v2  ;;  %v243_v3 = vld [vmem:[%s215_s24] sm:$0xff] }
  0x18   : > { %s101_s26 = scalar_lea.vmem %s2107_s0, %s1406_s22 }
  0x19   : > { %v129_v0 = vld [vmem:[%s101_s26] sm:$0xff]  ;;  %s213_s26 = scalar_lea.vmem [#allocation3], %s1405_s23 }
  0x1a   : > { %130 = vst [vmem:[%s99_s27] sm:$0xff] %v129_v0  ;;  %244 = vst [vmem:[%s213_s26] sm:$0xff] %v243_v3 }
  0x1b PF: > { %p1413_p5 = scmp.ge.s32.totalorder %s1656_s11, 1  ;;  %p249_p6 = scmp.lt.s32.totalorder %s1656_s11, 4 }
  0x1d   : > { %p250_p7 = pnand %p1413_p5, %p249_p6 }
  0x1f   : > { %253 = sbr.rel (%p250_p7) target bundleno = 1094 (0x446), region = 156 }
  0x26   : > { %s1776_s13 = sand.u32 1, %s1739_s12   ;;  %s290_s27 = sand.u32 1, %s1648_s30   ;;  %v338_v4 = vlaneseq  ;;  %v1666_v11 = vmov 0.0  }
  0x27   : > { %s1414_s19 = sshll.u32 %s1776_s13, 3  ;;  %s1780_s22 = sshll.u32 %s290_s27, 2 }
  0x28   : > { %v1782_v5 = vand.u32 127, %v338_v4  ;;  %v1784_v6 = vshrl.u32 %v338_v4, 7  ;;  %s258_s23 = scalar_lea.vmem [#allocation0], %s1414_s19  ;;  %s262_s28 = scalar_lea.vmem [#allocation1], %s1414_s19 }
  0x29   : > { %v322_v7 = vld [vmem:[%s258_s23] sm:$0xff]  ;;  %v325_v8 = vld [vmem:[%s262_s28] sm:$0xff]  ;;  %s266_s29 = scalar_lea.vmem [#allocation2], %s1414_s19  ;;  %s270_s15 = scalar_lea.vmem [#allocation3], %s1414_s19 }
  0x2a   : > { %v328_v9 = vld [vmem:[%s266_s29] sm:$0xff]  ;;  %v331_v10 = vld [vmem:[%s270_s15] sm:$0xff]  ;;  %s1786_s16 = scalar_lea.vmem [#allocation8], %s1414_s19  ;;  %s1789_s30 = scalar_lea.vmem [#allocation10], %s1414_s19  ;;  %v340_v5 = vmov %v1782_v5  ;;  %v343_v6 = vmov %v1784_v6  ;;  %vm1293_vm2 = vcmp.lt.s32.totalorder %v1782_v5, 8 }
  0x2b   : > { %333 = vst [vmem:[%s1786_s16] sm:$0xff] %v1666_v11  ;;  %334 = vst [vmem:[%s1789_s30] sm:$0xff] %v1666_v11  ;;  %s321_s17 = smov [#allocation15]  ;;  %s324_s18 = smov [#allocation16]  ;;  %v353_v5 = vmov %v1782_v5  ;;  %v356_v6 = vmov %v1784_v6  ;;  %vm347_vm0 = vcmp.eq.s32.totalorder %v343_v6, %v340_v5 }
  0x2c   : > { %s1792_s21 = scalar_lea.vmem [#allocation12], %s1414_s19  ;;  %s1795_s24 = scalar_lea.vmem [#allocation13], %s1414_s19  ;;  %323 = vst [vmem:[%s321_s17] sm:$0xff] %v322_v7  ;;  %326 = vst [vmem:[%s324_s18] sm:$0xff] %v325_v8  ;;  %vm360_vm1 = vcmp.eq.s32.totalorder %v356_v6, %v353_v5  ;;  %v1285_v5 = vmov %v1782_v5  ;;  %v1288_v6 = vmov %v1784_v6 }
  0x2d   : > { %335 = vst [vmem:[%s1792_s21] sm:$0xff] %v1666_v11  ;;  %336 = vst [vmem:[%s1795_s24] sm:$0xff] %v1666_v11  ;;  %s327_s25 = smov [#allocation17]  ;;  %s330_s26 = smov [#allocation18]  ;;  %vm1298_vm3 = vcmp.eq.s32.totalorder %v1288_v6, %v1285_v5  ;;  %v1336_v5 = vmov %v1782_v5  ;;  %v1305_v6 = vmov %v1784_v6 }
  0x2e   : > { %329 = vst [vmem:[%s327_s25] sm:$0xff] %v328_v9  ;;  %332 = vst [vmem:[%s330_s26] sm:$0xff] %v331_v10  ;;  %s337_s16 = smov %s1786_s16  ;;  %s350_s24 = smov %s1795_s24  ;;  %v1302_v5 = vmov %v1782_v5  ;;  %v1339_v6 = vmov %v1784_v6 }
  0x2f   : > { %s1289_s23 = smov [#allocation15]  ;;  %s1306_s28 = smov [#allocation16]  ;;  %v1319_v5 = vmov %v1782_v5  ;;  %v1322_v6 = vmov %v1784_v6  ;;  %vm1349_vm4 = vcmp.eq.s32.totalorder %v1339_v6, %v1336_v5 }
  0x30   : > { %s1323_s29 = smov [#allocation17]  ;;  %s1340_s15 = smov [#allocation18] }
  0x32   : > { %v344_v12 = vld [vmem:[%s337_s16] sm:$0xff] }
  0x33   : > { %v348_v13 = vsel %vm347_vm0, 1.0, %v344_v12  ;;  %v1295_v16 = vld [vmem:[%s1289_s23] sm:$0xff] }
  0x34   : > { %v357_v14 = vld [vmem:[%s350_s24] sm:$0xff]  ;;  %349 = vst [vmem:[%s337_s16] sm:$0xff] %v348_v13  ;;  %v1296_v18 = vsel %vm1293_vm2, %v1295_v16, 0.0 }
  0x35   : > { %v361_v15 = vsel %vm360_vm1, 1.0, %v357_v14  ;;  %v1312_v17 = vld [vmem:[%s1306_s28] sm:$0xff]  ;;  %v1297_v22 = vmul.f32 %v1296_v18, %v1296_v18 }
  0x36   : > { %362 = vst [vmem:[%s350_s24] sm:$0xff] %v361_v15  ;;  %v1313_v19 = vsel %vm1293_vm2, %v1312_v17, 0.0  ;;  %v1329_v20 = vld [vmem:[%s1323_s29] sm:$0xff] }
  0x37   : > { %v1346_v21 = vld [vmem:[%s1340_s15] sm:$0xff]  ;;  %v1314_v23 = vmul.f32 %v1313_v19, %v1313_v19  ;;  %v1330_v24 = vsel %vm1293_vm2, %v1329_v20, 0.0  ;;  %v1299_v29 = vsel %vm1298_vm3, 0.0, %v1297_v22 }
  0x38   : > { %v1347_v25 = vsel %vm1293_vm2, %v1346_v21, 0.0  ;;  %v1331_v26 = vmul.f32 %v1330_v24, %v1330_v24 }
  0x39   : > { %v1316_v27 = vadd.f32 %v1314_v23, %v1297_v22  ;;  %v1348_v28 = vmul.f32 %v1347_v25, %v1347_v25  ;;  %v1315_v30 = vadd.f32 %v1314_v23, %v1299_v29 }
  0x3b   : > { %v1333_v31 = vadd.f32 %v1331_v26, %v1316_v27  ;;  %v1332_v32 = vadd.f32 %v1331_v26, %v1315_v30  ;;  %v1350_v33 = vsel %vm1349_vm4, 0.0, %v1348_v28 }
  0x3d   : > { %v1352_v34 = vadd.f32 %v1348_v28, %v1333_v31  ;;  %v1351_v35 = vadd.f32 %v1350_v33, %v1332_v32 }
  0x3f   : > { %1353 = vadd.xlane.f32.xlu0 %v1352_v34 }
  0x43   : > { %1361 = vadd.xlane.f32.xlu0 %v1351_v35 }
  0xcc   : > { %v1354_v36 = vpop.xlane.xlu0 %1353 }
  0xcd   : > { %v1355_v37 = vrot.slane %v1354_v36, 4 }
  0xcf   : > { %v1356_v38 = vadd.f32 %v1355_v37, %v1354_v36 }
  0xd0   : > { %v1362_v39 = vpop.xlane.xlu0 %1361 }
  0xd1   : > { %v1357_v40 = vrot.slane %v1356_v38, 2  ;;  %v1363_v41 = vrot.slane %v1362_v39, 4 }
  0xd3   : > { %v1364_v42 = vadd.f32 %v1363_v41, %v1362_v39  ;;  %v1358_v43 = vadd.f32 %v1357_v40, %v1356_v38 }
  0xd5   : > { %v1365_v44 = vrot.slane %v1364_v42, 2  ;;  %v1359_v46 = vrot.slane %v1358_v43, 1 }
  0xd7   : > { %v1366_v45 = vadd.f32 %v1365_v44, %v1364_v42  ;;  %v1360_v49 = vadd.f32 %v1359_v46, %v1358_v43 }
  0xd9   : > { %v1367_v47 = vrot.slane %v1366_v45, 1 }
  0xdb   : > { %v1368_v48 = vadd.f32 %v1367_v47, %v1366_v45 }
  0xdd   : > { %1454 = vpush %v1368_v48 }
  0xde   : > { %1456 = vpush %v1360_v49 }
 0x10e   : > { %s1455_s17 = spop %1454 }
 0x10f   : > { %s1457_s18 = spop %1456 }
 0x110   : > { %s1371_s25 = smul.f32 1e-10, %s1457_s18 }
 0x112   : > { %p1372_p8 = scmp.le.f32.partialorder %s1455_s17, %s1371_s25 }
 0x113   : > { %s1824_s26 = smov (!%p1372_p8), 0  }
 0x114   : > { %1375 = sbr.rel (%p1372_p8) target bundleno = 958 (0x3be), region = 365 }
 0x11b LB: >> { %s1829_s23 = smov 0   ;;  %s1660_s26 = sphi %s1824_s26, %s2108_s26  }
 0x11c LB: >>> { %s467_s28 = smov [#allocation15]  ;;  %v471_v5 = vmov %v1782_v5  ;;  %v474_v6 = vmov %v1784_v6  ;;  %s487_s29 = smov [#allocation16]  ;;  %vm790_vm14 = vcmp.eq.s32.totalorder %v1784_v6, 0  ;;  %vm802_vm15 = vcmp.eq.s32.totalorder %v1784_v6, 7  ;;  %s1664_s23 = sphi %s1829_s23, %s466_s23  }
 0x11d   : >>> { %v491_v5 = vmov %v1782_v5  ;;  %v494_v6 = vmov %v1784_v6  ;;  %v475_v50 = vld [vmem:[%s467_s28] sm:$0xff]  ;;  %vm478_vm5 = vcmp.eq.s32.totalorder %v474_v6, %v471_v5  ;;  %s507_s15 = smov [#allocation18]  ;;  %s468_s17 = smov [#allocation19] }
 0x11e   : >>> { %vm498_vm6 = vcmp.eq.s32.totalorder %v494_v6, %v491_v5  ;;  %v511_v5 = vmov %v1782_v5  ;;  %v514_v6 = vmov %v1784_v6  ;;  %v479_v51 = vsel %vm478_vm5, %v475_v50, 0.0  ;;  %v495_v52 = vld [vmem:[%s487_s29] sm:$0xff]  ;;  %s488_s18 = smov [#allocation20]  ;;  %s508_s25 = smov [#allocation21] }
 0x11f   : >>> { %vm518_vm7 = vcmp.eq.s32.totalorder %v514_v6, %v511_v5  ;;  %v480_v53 = vrot.slane %v479_v51, 4  ;;  %v499_v54 = vsel %vm498_vm6, %v495_v52, 0.0  ;;  %v515_v55 = vld [vmem:[%s507_s15] sm:$0xff]  ;;  %s531_s28 = smov [#allocation20]  ;;  %s529_s29 = smov [#allocation19]  ;;  %v580_v5 = vmov %v1782_v5 }
 0x120   : >>> { %v500_v56 = vrot.slane %v499_v54, 4  ;;  %v519_v57 = vsel %vm518_vm7, %v515_v55, 0.0  ;;  %s533_s15 = smov [#allocation21]  ;;  %v583_v6 = vmov %v1784_v6  ;;  %v595_v5 = vmov %v1782_v5  ;;  %s1846_s19 = smov [#allocation16] }
 0x121   : >>> { %v481_v58 = vadd.f32 %v480_v53, %v479_v51  ;;  %v520_v59 = vrot.slane %v519_v57, 4  ;;  %v598_v6 = vmov %v1784_v6  ;;  %vm585_vm12 = vcmp.eq.s32.totalorder %v583_v6, %v580_v5  ;;  %s830_s27 = smov [#allocation26]  ;;  %s1851_s16 = smov %s1786_s16  ;;  %v615_v50 = vld [vmem:[%s1846_s19] sm:$0xff] }
 0x122   : >>> { %v501_v60 = vadd.f32 %v500_v56, %v499_v54  ;;  %vm600_vm13 = vcmp.eq.s32.totalorder %v598_v6, %v595_v5  ;;  %s1854_s30 = smov %s1789_s30  ;;  %s1857_s21 = smov %s1792_s21  ;;  %v838_v52 = vld [vmem:[%s1851_s16] sm:$0xff]  ;;  %v693_v5 = vmov %v1782_v5  ;;  %v696_v6 = vmov %v1784_v6 }
 0x123   : >>> { %v482_v61 = vrot.slane %v481_v58, 2  ;;  %v521_v62 = vadd.f32 %v520_v59, %v519_v57  ;;  %s1861_s24 = smov %s1795_s24  ;;  %v839_v53 = vld [vmem:[%s1854_s30] sm:$0xff]  ;;  %s832_s0 = smov [#allocation27]  ;;  %v666_v5 = vmov %v1782_v5  ;;  %v669_v6 = vmov %v1784_v6 }
 0x124   : >>> { %v502_v63 = vrot.slane %v501_v60, 2  ;;  %v840_v56 = vld [vmem:[%s1857_s21] sm:$0xff]  ;;  %v707_v5 = vmov %v1782_v5  ;;  %v710_v6 = vmov %v1784_v6  ;;  %vm700_vm0 = vcmp.eq.s32.totalorder %v696_v6, %v693_v5  ;;  %s466_s23 = sadd.s32 1, %s1664_s23  }
 0x125   : >>> { %v483_v0 = vadd.f32 %v482_v61, %v481_v58  ;;  %v522_v1 = vrot.slane %v521_v62, 2  ;;  %v841_v57 = vld [vmem:[%s1861_s24] sm:$0xff]  ;;  %v680_v5 = vmov %v1782_v5  ;;  %v683_v6 = vmov %v1784_v6  ;;  %p463_p9 = scmp.ge.s32.totalorder %s466_s23, 15  }
 0x126   : >>> { %v503_v2 = vadd.f32 %v502_v63, %v501_v60  ;;  %vm674_vm1 = vcmp.eq.s32.totalorder %v669_v6, %v666_v5  ;;  %vm715_vm3 = vcmp.eq.s32.totalorder %v710_v6, %v707_v5  ;;  %vm687_vm4 = vcmp.eq.s32.totalorder %v683_v6, %v680_v5 }
 0x127   : >>> { %v484_v3 = vrot.slane %v483_v0, 1  ;;  %v523_v4 = vadd.f32 %v522_v1, %v521_v62  ;;  %vm729_vm5 = vcmp.eq.s32.totalorder %v1782_v5, 0  ;;  %vm733_vm6 = vcmp.eq.s32.totalorder %v1782_v5, 1 }
 0x128   : >>> { %v504_v7 = vrot.slane %v503_v2, 1  ;;  %vm746_vm7 = vcmp.eq.s32.totalorder %v1782_v5, 7  ;;  %v367_v5 = vmov (%p463_p9), %v1782_v5  ;;  %v370_v6 = vmov (%p463_p9), %v1784_v6 }
 0x129   : >>> { %v485_v8 = vadd.f32 %v484_v3, %v483_v0  ;;  %v524_v9 = vrot.slane %v523_v4, 1  ;;  %v420_v5 = vmov (%p463_p9), %v1782_v5 }
 0x12a   : >>> { %v505_v10 = vadd.f32 %v504_v7, %v503_v2 }
 0x12b   : >>> { %486 = vst [vmem:[%s468_s17] sm:$0x1] %v485_v8  ;;  %v525_v11 = vadd.f32 %v524_v9, %v523_v4  ;;  %s568_s17 = smov [#allocation22] }
 0x12c   : >>> { %506 = vst [vmem:[%s488_s18] sm:$0x1] %v505_v10  ;;  %s570_s18 = smov [#allocation23] }
 0x12d   : >>> { %526 = vst [vmem:[%s508_s25] sm:$0x1] %v525_v11  ;;  %s527_s25 = smov [#allocation24] }
 0x12e   : >>> { %s572_s25 = smov %s527_s25 }
 0x132   : >>> { %v530_v14 = vld [vmem:[%s529_s29] sm:$0xff]  ;;  %s576_s29 = smov [#allocation24] }
 0x133   : >>> { %v532_v12 = vld [vmem:[%s531_s28] sm:$0xff]  ;;  %v553_v27 = vand.u32 2147483647, %v530_v14  ;;  %s528_s28 = smov [#allocation25] }
 0x134   : >>> { %v536_v13 = vmul.f32 2.0, %v532_v12  ;;  %v534_v15 = vld [vmem:[%s533_s15] sm:$0xff]  ;;  %v554_v32 = vand.u32 2147483647, %v532_v12  ;;  %s574_s28 = smov %s528_s28  ;;  %s591_s15 = smov [#allocation25] }
 0x135   : >>> { %v535_v16 = vsub.f32 %v534_v15, %v530_v14  ;;  %v555_v28 = vand.u32 2147483647, %v534_v15 }
 0x136   : >>> { %1510 = vrcp.f32 %v536_v13 }
 0x137   : >>> { %v556_v31 = vmin.f32 %v553_v27, %v555_v28 }
 0x139   : >>> { %v557_v33 = vmul.f32 1.1920929e-08, %v556_v31 }
 0x13b   : >>> { %vm558_vm11 = vcmp.le.f32.partialorder %v554_v32, %v557_v33 }
 0x140   : >>> { %v1511_v17 = vpop.eup %1510 }
 0x141   : >>> { %v538_v18 = vmul.f32 %v1511_v17, %v535_v16 }
 0x143   : >>> { %v540_v19 = vmul.f32 %v538_v18, %v538_v18  ;;  %vm539_vm10 = vcmp.ge.f32.partialorder %v538_v18, 0.0 }
 0x145   : >>> { %v541_v20 = vadd.f32 1.0, %v540_v19 }
 0x147   : >>> { %1512 = vrsqrt.f32 %v541_v20  ;;  %vm544_vm8 = vcmp.eq.f32.partialorder %v541_v20, inf  ;;  %v547_v22 = vand.u32 2147483648, %v541_v20  ;;  %vm546_vm9 = vcmp.eq.f32.partialorder %v541_v20, 0.0 }
 0x151   : >>> { %v1513_v21 = vpop.eup %1512 }
 0x152   : >>> { %v543_v23 = vmul.f32 %v1513_v21, %v541_v20 }
 0x154   : >>> { %v545_v24 = vsel %vm544_vm8, %v541_v20, %v543_v23  ;;  %vm382_vm8 = vcmp.eq.s32.totalorder (%p463_p9), %v370_v6, %v367_v5  ;;  %v423_v6 = vmov (%p463_p9), %v1784_v6  ;;  %v386_v5 = vmov (%p463_p9), %v1782_v5 }
 0x155   : >>> { %v548_v25 = vsel %vm546_vm9, %v547_v22, %v545_v24  ;;  %v389_v6 = vmov (%p463_p9), %v1784_v6  ;;  %v403_v5 = vmov (%p463_p9), %v1782_v5  ;;  %vm435_vm9 = vcmp.eq.s32.totalorder (%p463_p9), %v423_v6, %v420_v5 }
 0x156   : >>> { %v549_v26 = vxor.u32 2147483648, %v548_v25  ;;  %v406_v6 = vmov (%p463_p9), %v1784_v6 }
 0x158   : >>> { %v550_v29 = vsel %vm539_vm10, %v548_v25, %v549_v26 }
 0x159   : >>> { %v551_v30 = vadd.f32 %v550_v29, %v538_v18 }
 0x15b   : >>> { %1514 = vrcp.f32 %v551_v30 }
 0x165   : >>> { %v1515_v34 = vpop.eup %1514 }
 0x166   : >>> { %v559_v35 = vsel %vm558_vm11, 0.0, %v1515_v34 }
 0x167   : >>> { %v560_v36 = vmul.f32 %v559_v35, %v559_v35  ;;  %v564_v37 = vmul.f32 %v559_v35, %v532_v12 }
 0x169   : >>> { %v561_v38 = vadd.f32 1.0, %v560_v36  ;;  %v565_v39 = vsub.f32 %v530_v14, %v564_v37  ;;  %v567_v40 = vadd.f32 %v564_v37, %v534_v15 }
 0x16b   : >>> { %1516 = vrsqrt.f32 %v561_v38  ;;  %569 = vst [vmem:[%s568_s17] sm:$0xff] %v565_v39  ;;  %571 = vst [vmem:[%s570_s18] sm:$0xff] %v567_v40  ;;  %s589_s17 = smov [#allocation26]  ;;  %s606_s18 = smov [#allocation26] }
 0x175   : >>> { %v1517_v41 = vpop.eup %1516 }
 0x176   : >>> { %573 = vst [vmem:[%s572_s25] sm:$0xff] %v1517_v41  ;;  %v563_v42 = vmul.f32 %v1517_v41, %v559_v35  ;;  %s1844_s25 = smov [#allocation15] }
 0x177   : >>> { %v614_v49 = vld [vmem:[%s1844_s25] sm:$0xff] }
 0x178   : >>> { %575 = vst [vmem:[%s574_s28] sm:$0xff] %v563_v42  ;;  %s604_s28 = smov [#allocation27] }
 0x17d   : >>> { %v577_v43 = vld [vmem:[%s576_s29] ss:$0 sm:$0xff]  ;;  %s1848_s29 = smov [#allocation18] }
 0x17e   : >>> { %v586_v44 = vsel %vm585_vm12, %v577_v43, 0.0  ;;  %v617_v51 = vld [vmem:[%s1848_s29] sm:$0xff] }
 0x17f   : >>> { %587 = vadd.xlane.f32.xlu0 %v586_v44  ;;  %v592_v45 = vld [vmem:[%s591_s15] ss:$0 sm:$0xff]  ;;  %s1863_s15 = smov [#allocation17] }
 0x180   : >>> { %v601_v46 = vsel %vm600_vm13, %v592_v45, 0.0  ;;  %v616_v58 = vld [vmem:[%s1863_s15] sm:$0xff] }
 0x183   : >>> { %602 = vadd.xlane.f32.xlu0 %v601_v46 }
 0x20c   : >>> { %v588_v47 = vpop.xlane.xlu0 %587 }
 0x20d   : >>> { %590 = vst [vmem:[%s589_s17] sm:$0xff] %v588_v47  ;;  %s608_s17 = smov [#allocation27] }
 0x210   : >>> { %v603_v48 = vpop.xlane.xlu0 %602 }
 0x211   : >>> { %605 = vst [vmem:[%s604_s28] sm:$0xff] %v603_v48  ;;  %s1896_s28 = smov [#allocation16] }
 0x214   : >>> { %v607_v54 = vld [vmem:[%s606_s18] sm:$0xff]  ;;  %s1892_s18 = smov [#allocation18] }
 0x215   : >>> { %v831_v55 = vld [vmem:[%s830_s27] sm:$0xff]  ;;  %v618_v59 = vmul.f32 %v614_v49, %v607_v54  ;;  %v621_v60 = vmul.f32 %v615_v50, %v607_v54  ;;  %v628_v61 = vmul.f32 %v617_v51, %v607_v54  ;;  %v625_v4 = vmul.f32 %v616_v58, %v607_v54  ;;  %s636_s27 = smov [#allocation25] }
 0x216   : >>> { %v842_v62 = vmul.f32 %v838_v52, %v831_v55  ;;  %v845_v63 = vmul.f32 %v839_v53, %v831_v55  ;;  %v849_v0 = vmul.f32 %v840_v56, %v831_v55  ;;  %v852_v1 = vmul.f32 %v841_v57, %v831_v55  ;;  %v637_v24 = vld [vmem:[%s636_s27] ss:$0 sm:$0xff]  ;;  %s703_s27 = smov [#allocation18] }
 0x218   : >>> { %v609_v2 = vld [vmem:[%s608_s17] sm:$0xff]  ;;  %s690_s17 = smov [#allocation17] }
 0x219   : >>> { %v833_v3 = vld [vmem:[%s832_s0] sm:$0xff]  ;;  %v622_v7 = vmul.f32 %v617_v51, %v609_v2  ;;  %v624_v8 = vmul.f32 %v614_v49, %v609_v2  ;;  %v627_v9 = vmul.f32 %v615_v50, %v609_v2  ;;  %v619_v14 = vmul.f32 %v616_v58, %v609_v2  ;;  %s634_s0 = smov [#allocation24] }
 0x21a   : >>> { %v843_v10 = vmul.f32 %v840_v56, %v833_v3  ;;  %v846_v11 = vmul.f32 %v841_v57, %v833_v3  ;;  %v848_v12 = vmul.f32 %v838_v52, %v833_v3  ;;  %v851_v13 = vmul.f32 %v839_v53, %v833_v3  ;;  %v635_v23 = vld [vmem:[%s634_s0] ss:$0 sm:$0xff]  ;;  %s662_s0 = smov [#allocation15] }
 0x21b   : >>> { %v623_v15 = vsub.f32 %v621_v60, %v622_v7  ;;  %v629_v16 = vadd.f32 %v628_v61, %v627_v9  ;;  %v626_v18 = vadd.f32 %v625_v4, %v624_v8  ;;  %v620_v22 = vsub.f32 %v618_v59, %v619_v14 }
 0x21c   : >>> { %v844_v17 = vsub.f32 %v842_v62, %v843_v10  ;;  %v847_v19 = vsub.f32 %v845_v63, %v846_v11  ;;  %v850_v20 = vadd.f32 %v849_v0, %v848_v12  ;;  %v853_v21 = vadd.f32 %v852_v1, %v851_v13 }
 0x21d   : >>> { %631 = vst [vmem:[%s1846_s19] sm:$0xff] %v623_v15  ;;  %633 = vst [vmem:[%s1848_s29] sm:$0xff] %v629_v16  ;;  %s1890_s19 = smov [#allocation17]  ;;  %s663_s29 = smov [#allocation22] }
 0x21e   : >>> { %854 = vst [vmem:[%s1851_s16] sm:$0xff] %v844_v17  ;;  %632 = vst [vmem:[%s1863_s15] sm:$0xff] %v626_v18  ;;  %s858_s16 = smov %s1786_s16  ;;  %s704_s15 = smov [#allocation23]  ;;  %v670_v55 = vld [vmem:[%s663_s29] ss:$0 sm:$0xff] }
 0x21f   : >>> { %855 = vst [vmem:[%s1854_s30] sm:$0xff] %v847_v19  ;;  %856 = vst [vmem:[%s1857_s21] sm:$0xff] %v850_v20  ;;  %s859_s21 = smov %s1792_s21  ;;  %s1883_s30 = smov %s1789_s30  ;;  %v711_v56 = vld [vmem:[%s704_s15] ss:$0 sm:$0xff] }
 0x220   : >>> { %857 = vst [vmem:[%s1861_s24] sm:$0xff] %v853_v21  ;;  %630 = vst [vmem:[%s1844_s25] sm:$0xff] %v620_v22  ;;  %s1886_s24 = smov %s1795_s24  ;;  %s1894_s25 = smov [#allocation15] }
 0x221   : >>> { %s719_s29 = smov [#allocation16]  ;;  %s1668_s15 = smov 127  }
 0x224   : >>> { %v645_v39 = vld [vmem:[%s1892_s18] sm:$0xff] }
 0x225   : >>> { %v860_v25 = vld [vmem:[%s858_s16] ss:$0 sm:$0xff]  ;;  %v1433_v27 = vld [vmem:[%s858_s16 + $0x7] ss:$0 sm:$0xff]  ;;  %v653_v42 = vmul.f32 %v645_v39, %v637_v24  ;;  %v656_v46 = vmul.f32 %v645_v39, %v635_v23 }
 0x226   : >>> { %v1432_v26 = vld [vmem:[%s858_s16 - $0x1] sm:$0xfe]  ;;  %v1437_v34 = vld [vmem:[%s1883_s30 + $0x7] ss:$0 sm:$0xff] }
 0x227   : >>> { %v867_v28 = vsel %vm790_vm14, %v860_v25, %v1432_v26  ;;  %v871_v29 = vld [vmem:[%s859_s21] ss:$0 sm:$0xff]  ;;  %v1435_v30 = vld [vmem:[%s859_s21 + $0x1] sm:$0x7f] }
 0x228   : >>> { %v884_v31 = vld [vmem:[%s1883_s30] ss:$0 sm:$0xff]  ;;  %870 = vst [vmem:[%s858_s16] sm:$0xff] %v867_v28  ;;  %v879_v32 = vsel %vm802_vm15, %v1433_v27, %v1435_v30  ;;  %v1439_v37 = vld [vmem:[%s1886_s24 + $0x1] sm:$0x7f] }
 0x229   : >>> { %v1436_v33 = vld [vmem:[%s1883_s30 - $0x1] sm:$0xfe]  ;;  %1434 = vst [vmem:[%s858_s16 + $0x1] sm:$0x1] %v871_v29  ;;  %881 = vst [vmem:[%s859_s21] sm:$0xff] %v879_v32  ;;  %v903_v40 = vsel %vm802_vm15, %v1437_v34, %v1439_v37 }
 0x22a   : >>> { %v895_v35 = vld [vmem:[%s1886_s24] ss:$0 sm:$0xff]  ;;  %v891_v36 = vsel %vm790_vm14, %v884_v31, %v1436_v33 }
 0x22b   : >>> { %v644_v38 = vld [vmem:[%s1890_s19] sm:$0xff]  ;;  %894 = vst [vmem:[%s1883_s30] sm:$0xff] %v891_v36  ;;  %905 = vst [vmem:[%s1886_s24] sm:$0xff] %v903_v40 }
 0x22c   : >>> { %v652_v41 = vmul.f32 %v644_v38, %v635_v23  ;;  %v655_v43 = vmul.f32 %v644_v38, %v637_v24  ;;  %v642_v44 = vld [vmem:[%s1894_s25] sm:$0xff]  ;;  %1438 = vst [vmem:[%s1883_s30 + $0x1] sm:$0x1] %v895_v35 }
 0x22d   : >>> { %v643_v45 = vld [vmem:[%s1896_s28] sm:$0xff]  ;;  %v646_v47 = vmul.f32 %v642_v44, %v635_v23  ;;  %v649_v49 = vmul.f32 %v642_v44, %v637_v24 }
 0x22e   : >>> { %v647_v48 = vmul.f32 %v643_v45, %v637_v24  ;;  %v654_v50 = vsub.f32 %v652_v41, %v653_v42  ;;  %v650_v51 = vmul.f32 %v643_v45, %v635_v23  ;;  %v657_v52 = vadd.f32 %v656_v46, %v655_v43 }
 0x230   : >>> { %v648_v53 = vsub.f32 %v646_v47, %v647_v48  ;;  %660 = vst [vmem:[%s1890_s19] sm:$0xff] %v654_v50  ;;  %v651_v54 = vadd.f32 %v650_v51, %v649_v49  ;;  %661 = vst [vmem:[%s1892_s18] sm:$0xff] %v657_v52  ;;  %s677_s19 = smov [#allocation16]  ;;  %s1930_s18 = smov [#allocation17] }
 0x232   : >>> { %658 = vst [vmem:[%s1894_s25] sm:$0xff] %v648_v53  ;;  %659 = vst [vmem:[%s1896_s28] sm:$0xff] %v651_v54  ;;  %s718_s25 = smov [#allocation15]  ;;  %s1667_s28 = smov 1  }
 0x237   : >>> { %v697_v57 = vld [vmem:[%s690_s17] sm:$0xff] }
 0x238   : >>> { %v701_v58 = vsel %vm700_vm0, 0.0, %v697_v57  ;;  %v712_v60 = vld [vmem:[%s703_s27] sm:$0xff] }
 0x239   : >>> { %v671_v59 = vld [vmem:[%s662_s0] sm:$0xff]  ;;  %702 = vst [vmem:[%s690_s17] sm:$0xff] %v701_v58  ;;  %v716_v63 = vsel %vm715_vm3, %v711_v56, %v712_v60  ;;  %s1933_s17 = smov [#allocation18] }
 0x23a   : >>> { %v675_v61 = vsel %vm674_vm1, %v670_v55, %v671_v59  ;;  %v684_v62 = vld [vmem:[%s677_s19] sm:$0xff]  ;;  %717 = vst [vmem:[%s703_s27] sm:$0xff] %v716_v63  ;;  %s806_s27 = smov [#allocation16] }
 0x23b   : >>> { %676 = vst [vmem:[%s662_s0] sm:$0xff] %v675_v61  ;;  %v688_v0 = vsel %vm687_vm4, 0.0, %v684_v62  ;;  %s782_s0 = smov [#allocation15] }
 0x23c   : >>> { %689 = vst [vmem:[%s677_s19] sm:$0xff] %v688_v0  ;;  %s783_s19 = smov [#allocation17] }
 0x240   : >>> { %v756_v1 = vld [vmem:[%s1930_s18] sm:$0xff] }
 0x241   : >>> { %757 = vrot.lane.b32.xlu0 %v756_v1, %s1667_s28  ;;  %v752_v4 = vld [vmem:[%s1933_s17] sm:$0xff] }
 0x242   : >>> { %v724_v2 = vld [vmem:[%s718_s25] sm:$0xff] }
 0x243   : >>> { %725 = vrot.lane.b32.xlu1 %v724_v2, %s1667_s28  ;;  %v720_v3 = vld [vmem:[%s719_s29] sm:$0xff] }
 0x247   : >>> { %721 = vrot.lane.b32.xlu1 %v720_v3, %s1667_s28 }
 0x24b   : >>> { %742 = vrot.lane.b32.xlu1 %v720_v3, %s1668_s15 }
 0x24f   : >>> { %753 = vrot.lane.b32.xlu1 %v752_v4, %s1667_s28  ;;  %s371_s28 = smov (%p463_p9), [#allocation15] }
 0x253   : >>> { %774 = vrot.lane.b32.xlu1 %v752_v4, %s1668_s15  ;;  %s407_s15 = smov (%p463_p9), [#allocation17] }
 0x2b3   : >>> { %v758_v13 = vpop.permute.xlu0 %757 }
 0x2b4   : >>> { %v762_v15 = vsel %vm729_vm5, %v756_v1, %v758_v13 }
 0x2b5   : >>> { %v726_v7 = vpop.permute.xlu1 %725 }
 0x2b6   : >>> { %v730_v8 = vsel %vm729_vm5, %v724_v2, %v726_v7 }
 0x2b9   : >>> { %v722_v9 = vpop.permute.xlu1 %721 }
 0x2ba   : >>> { %v734_v10 = vsel %vm733_vm6, %v722_v9, %v730_v8 }
 0x2bb   : >>> { %v740_v11 = vsel %vm1293_vm2, %v734_v10, 0.0 }
 0x2bc   : >>> { %748 = vst [vmem:[%s718_s25] sm:$0xff] %v740_v11  ;;  %s807_s25 = smov [#allocation18] }
 0x2bd   : >>> { %v743_v12 = vpop.permute.xlu1 %742 }
 0x2be   : >>> { %v747_v14 = vsel %vm746_vm7, %v724_v2, %v743_v12 }
 0x2bf   : >>> { %749 = vst [vmem:[%s719_s29] sm:$0xff] %v747_v14  ;;  %s390_s29 = smov (%p463_p9), [#allocation16] }
 0x2c1   : >>> { %v754_v16 = vpop.permute.xlu1 %753 }
 0x2c2   : >>> { %v766_v17 = vsel %vm733_vm6, %v754_v16, %v762_v15 }
 0x2c3   : >>> { %v784_v18 = vld [vmem:[%s782_s0] ss:$0 sm:$0xff]  ;;  %v1425_v20 = vld [vmem:[%s782_s0 + $0x7] ss:$0 sm:$0xff]  ;;  %v772_v22 = vsel %vm1293_vm2, %v766_v17, 0.0 }
 0x2c4   : >>> { %v1424_v19 = vld [vmem:[%s782_s0 - $0x1] sm:$0xfe]  ;;  %780 = vst [vmem:[%s1930_s18] sm:$0xff] %v772_v22  ;;  %s906_s18 = sadd.s32 (%p463_p9), 1, %s1660_s26  }
 0x2c5   : >>> { %v791_v21 = vsel %vm790_vm14, %v784_v18, %v1424_v19  ;;  %v775_v23 = vpop.permute.xlu1 %774  ;;  %p459_p10 = scmp.ge.s32.totalorder (%p463_p9), %s906_s18, 15  ;;  %s2108_s26 = smov (%p463_p9), %s906_s18 }
 0x2c6   : >>> { %794 = vst [vmem:[%s782_s0] sm:$0xff] %v791_v21  ;;  %v808_v24 = vld [vmem:[%s806_s27] ss:$0 sm:$0xff]  ;;  %v1429_v26 = vld [vmem:[%s806_s27 + $0x7] ss:$0 sm:$0xff]  ;;  %v779_v27 = vsel %vm746_vm7, %v756_v1, %v775_v23 }
 0x2c7   : >>> { %v1428_v25 = vld [vmem:[%s806_s27 - $0x1] sm:$0xfe]  ;;  %781 = vst [vmem:[%s1933_s17] sm:$0xff] %v779_v27  ;;  %s424_s17 = smov (%p463_p9), [#allocation18] }
 0x2c8   : >>> { %v815_v28 = vsel %vm790_vm14, %v808_v24, %v1428_v25 }
 0x2c9   : >>> { %818 = vst [vmem:[%s806_s27] sm:$0xff] %v815_v28 }
 0x2cb   : >>> { %v795_v29 = vld [vmem:[%s783_s19] ss:$0 sm:$0xff]  ;;  %v1427_v30 = vld [vmem:[%s783_s19 + $0x1] sm:$0x7f] }
 0x2cc   : >>> { %1426 = vst [vmem:[%s782_s0 + $0x1] sm:$0x1] %v795_v29  ;;  %v803_v31 = vsel %vm802_vm15, %v1425_v20, %v1427_v30  ;;  %465 = sbr.rel (!%p463_p9) target bundleno = 284 (0x11c), region = 360 }
 0x2cd   : >>> { %805 = vst [vmem:[%s783_s19] sm:$0xff] %v803_v31 }
 0x2ce   : >>> { %v819_v32 = vld [vmem:[%s807_s25] ss:$0 sm:$0xff]  ;;  %v1431_v33 = vld [vmem:[%s807_s25 + $0x1] sm:$0x7f] }
 0x2cf   : >>> { %1430 = vst [vmem:[%s806_s27 + $0x1] sm:$0x1] %v819_v32  ;;  %v827_v34 = vsel %vm802_vm15, %v1429_v26, %v1431_v33 }
 0x2d0   : >>> { %829 = vst [vmem:[%s807_s25] sm:$0xff] %v827_v34 }
 0x2d3   : >> { %v377_v35 = vld [vmem:[%s371_s28] sm:$0xff] }
 0x2d4   : >> { %v378_v37 = vsel %vm1293_vm2, %v377_v35, 0.0  ;;  %v413_v39 = vld [vmem:[%s407_s15] sm:$0xff] }
 0x2d5   : >> { %v379_v41 = vmul.f32 %v378_v37, %v378_v37  ;;  %v414_v43 = vsel %vm1293_vm2, %v413_v39, 0.0 }
 0x2d6   : >> { %v396_v36 = vld [vmem:[%s390_s29] sm:$0xff]  ;;  %v415_v45 = vmul.f32 %v414_v43, %v414_v43 }
 0x2d7   : >> { %v397_v38 = vsel %vm1293_vm2, %v396_v36, 0.0  ;;  %v430_v40 = vld [vmem:[%s424_s17] sm:$0xff]  ;;  %v383_v48 = vsel %vm382_vm8, 0.0, %v379_v41 }
 0x2d8   : >> { %v398_v42 = vmul.f32 %v397_v38, %v397_v38  ;;  %v431_v44 = vsel %vm1293_vm2, %v430_v40, 0.0 }
 0x2d9   : >> { %v432_v47 = vmul.f32 %v431_v44, %v431_v44 }
 0x2da   : >> { %v400_v46 = vadd.f32 %v398_v42, %v379_v41  ;;  %v399_v49 = vadd.f32 %v398_v42, %v383_v48 }
 0x2db   : >> { %v436_v52 = vsel %vm435_vm9, 0.0, %v432_v47 }
 0x2dc   : >> { %v417_v50 = vadd.f32 %v415_v45, %v400_v46  ;;  %v416_v51 = vadd.f32 %v415_v45, %v399_v49 }
 0x2de   : >> { %v438_v53 = vadd.f32 %v432_v47, %v417_v50  ;;  %v437_v54 = vadd.f32 %v436_v52, %v416_v51 }
 0x2e0   : >> { %439 = vadd.xlane.f32.xlu0 %v438_v53 }
 0x2e4   : >> { %447 = vadd.xlane.f32.xlu0 %v437_v54 }
 0x36d   : >> { %v440_v55 = vpop.xlane.xlu0 %439 }
 0x36e   : >> { %v441_v56 = vrot.slane %v440_v55, 4 }
 0x370   : >> { %v442_v57 = vadd.f32 %v441_v56, %v440_v55 }
 0x371   : >> { %v448_v58 = vpop.xlane.xlu0 %447 }
 0x372   : >> { %v443_v59 = vrot.slane %v442_v57, 2  ;;  %v449_v60 = vrot.slane %v448_v58, 4 }
 0x374   : >> { %v450_v61 = vadd.f32 %v449_v60, %v448_v58  ;;  %v444_v62 = vadd.f32 %v443_v59, %v442_v57 }
 0x376   : >> { %v451_v63 = vrot.slane %v450_v61, 2  ;;  %v445_v1 = vrot.slane %v444_v62, 1 }
 0x378   : >> { %v452_v0 = vadd.f32 %v451_v63, %v450_v61  ;;  %v446_v4 = vadd.f32 %v445_v1, %v444_v62 }
 0x37a   : >> { %v453_v2 = vrot.slane %v452_v0, 1 }
 0x37c   : >> { %v454_v3 = vadd.f32 %v453_v2, %v452_v0 }
 0x37e   : >> { %1458 = vpush %v454_v3 }
 0x37f   : >> { %1460 = vpush %v446_v4 }
 0x3af   : >> { %s1459_s23 = spop %1458 }
 0x3b0   : >> { %s1461_s0 = spop %1460 }
 0x3b1   : >> { %s457_s27 = smul.f32 1e-10, %s1461_s0 }
 0x3b3   : >> { %p458_p11 = scmp.le.f32.partialorder %s1459_s23, %s457_s27 }
 0x3b5   : >> { %p460_p12 = por %p459_p10, %p458_p11 }
 0x3b7   : > { %908 = sbr.rel (!%p460_p12) target bundleno = 283 (0x11b), region = 371 }
 0x3be PF: > { %s913_s19 = smov [#allocation15]  ;;  %v917_v5 = vmov %v1782_v5  ;;  %v920_v6 = vmov %v1784_v6  ;;  %s933_s25 = smov [#allocation18] }
 0x3bf   : > { %v937_v5 = vmov %v1782_v5  ;;  %v940_v6 = vmov %v1784_v6  ;;  %v921_v7 = vld [vmem:[%s913_s19] sm:$0xff]  ;;  %vm924_vm10 = vcmp.eq.s32.totalorder %v920_v6, %v917_v5  ;;  %s909_s26 = sand.u32 7, %s1739_s12   ;;  %s2109_s29 = scalar_lea.vmem [#allocation5], %s1780_s22 }
 0x3c0   : > { %vm944_vm11 = vcmp.eq.s32.totalorder %v940_v6, %v937_v5  ;;  %v925_v8 = vsel %vm924_vm10, %v921_v7, 0.0  ;;  %v941_v10 = vld [vmem:[%s933_s25] sm:$0xff]  ;;  %s910_s18 = scalar_lea.vmem [#allocation4], %s909_s26  ;;  %s912_s28 = scalar_lea.vmem [#allocation6], %s909_s26 }
 0x3c1   : > { %v926_v9 = vrot.slane %v925_v8, 4  ;;  %v945_v11 = vsel %vm944_vm11, %v941_v10, 0.0  ;;  %s914_s18 = smov %s910_s18  ;;  %s934_s28 = smov %s912_s28 }
 0x3c2   : > { %v946_v13 = vrot.slane %v945_v11, 4  ;;  %s2110_s15 = scalar_lea.vmem [#allocation7], %s1780_s22  ;;  %s996_s27 = sshrl.u32 (%p1754_p3), %s1739_s12, 3 }
 0x3c3   : > { %v927_v12 = vadd.f32 %v926_v9, %v925_v8  ;;  %s2111_s19 = scalar_lea.vmem (%p1754_p3), [#allocation5], %s1780_s22  ;;  %s1446_s25 = sshll.u32 (%p1754_p3), %s996_s27, 2 }
 0x3c4   : > { %v947_v15 = vadd.f32 %v946_v13, %v945_v11 }
 0x3c5   : > { %v928_v14 = vrot.slane %v927_v12, 2 }
 0x3c6   : > { %v948_v17 = vrot.slane %v947_v15, 2 }
 0x3c7   : > { %v929_v16 = vadd.f32 %v928_v14, %v927_v12 }
 0x3c8   : > { %v949_v19 = vadd.f32 %v948_v17, %v947_v15 }
 0x3c9   : > { %v930_v18 = vrot.slane %v929_v16, 1 }
 0x3ca   : > { %v950_v6 = vrot.slane %v949_v19, 1 }
 0x3cb   : > { %v931_v5 = vadd.f32 %v930_v18, %v929_v16 }
 0x3cc   : > { %v951_v20 = vadd.f32 %v950_v6, %v949_v19 }
 0x3cd   : > { %932 = vst [vmem:[%s914_s18] sm:$0x1] %v931_v5 }
 0x3ce   : > { %952 = vst [vmem:[%s934_s28] sm:$0x1] %v951_v20  ;;  %s998_s28 = scalar_lea.vmem (%p1754_p3), %s2098_s4, %s1446_s25 }
 0x3d0   : > { %995 = sbr.rel (!%p1754_p3) target bundleno = 990 (0x3de), region = 174 }
 0x3d4   : > { %v956_v21 = vld [vmem:[#allocation4] sm:$0xf] }
 0x3d5   : > { %958 = vst [vmem:[%s2109_s29] sm:$0xf] %v956_v21  ;;  %v962_v22 = vld [vmem:[#allocation6] sm:$0xf] }
 0x3d6   : > { %964 = vst [vmem:[%s2110_s15] sm:$0xf] %v962_v22 }
 0x3dc   : > { %v1014_v23 = vld [vmem:[%s2111_s19] sm:$0xf] }
 0x3dd   : > { %1015 = vst [vmem:[%s998_s28] sm:$0xf] %v1014_v23 }
 0x3de PF: > { %1032 = sbr.rel (!%p1754_p3) target bundleno = 998 (0x3e6), region = 208  ;;  %s1033_s29 = sshrl.u32 (%p1754_p3), %s1739_s12, 3 }
 0x3df   : > { %s2112_s15 = scalar_lea.vmem (%p1754_p3), [#allocation7], %s1780_s22  ;;  %s1447_s0 = sshll.u32 (%p1754_p3), %s1033_s29, 2 }
 0x3e0   : > { %s1035_s19 = scalar_lea.vmem (%p1754_p3), %s2099_s5, %s1447_s0 }
 0x3e4   : > { %v1051_v24 = vld [vmem:[%s2112_s15] sm:$0xf] (%p1754_p3) }
 0x3e5   : > { %1052 = vst [vmem:[%s1035_s19] sm:$0xf] %v1051_v24 }
 0x3e6 PF: > { %s2013_s27 = sshll.u32 %s1739_s12, 7  ;;  %s1083_s25 = sshll.u32 %s1789_s30, 4  ;;  %s1084_s25 = int_to_ptr.vmem [resolvable:$true] %s1083_s25 }
 0x3e7   : > { %s1081_s18 = scalar_lea.hbm %s2101_s7, %s2013_s27  ;;  %s1518_s22 = scalar_lea.vmem %s1084_s25, 128 }
 0x3e8   : > { %p1519_p13 = scmp.ne.s32.totalorder %s1084_s25, %s1518_s22  ;;  %s1669_s28 = smov [#allocation10]  }
 0x3e9   : > { %s1520_s29 = sshll.u32 %s1669_s28, 4  ;;  %s1521_s29 = int_to_ptr.vmem [resolvable:$false] %s1520_s29 }
 0x3ea   : > { %s1522_s17 = scalar_lea.vmem %s1521_s29, 256  ;;  %p1523_p0 = scmp.lt.s32.totalorder %s1084_s25, %s1521_s29 }
 0x3eb   : > { %p1524_p1 = scmp.lt.s32.totalorder %s1522_s17, %s1518_s22 }
 0x3ed   : > { %p1525_p2 = por %p1524_p1, %p1523_p0 }
 0x3ef   : > { %p1526_p3 = pnand %p1525_p2, %p1519_p13 }
 0x3f1   : > { %1529 = shalt.err (!%p1526_p3)
}
 0x3f2   : > { %s1530_s12 = scalar_lea.hbm %s1081_s18, 128  ;;  %s1532_s0 = scalar_lea.hbm %s2101_s7, 384 }
 0x3f3   : > { %p1531_p4 = scmp.ne.s32.totalorder %s1081_s18, %s1530_s12  ;;  %p1533_p5 = scmp.lt.u32.totalorder %s1081_s18, %s2101_s7 }
 0x3f4   : > { %p1534_p6 = scmp.lt.u32.totalorder %s1532_s0, %s1530_s12  ;;  %p1536_p8 = scmp.lt.u32.totalorder %s1530_s12, %s1081_s18 }
 0x3f6   : > { %p1535_p7 = por %p1534_p6, %p1533_p5 }
 0x3f8   : > { %p1537_p9 = por %p1536_p8, %p1535_p7 }
 0x3fa   : > { %p1538_p10 = pnand %p1537_p9, %p1531_p4 }
 0x3fc   : > { %1541 = shalt.err (!%p1538_p10)
}
 0x3fd   : > { %s2113_s20 = scalar_lea.sflag [#allocation11], %s1776_s13  ;;  %s1071_s28 = scalar_lea.hbm %s2100_s6, %s2013_s27 }
 0x3fe   : > { %1086 = dma.vmem_to_hbm [thread:$0]  %s1084_s25, 128, %s1081_s18, %s2113_s20  }
 0x3ff   : > { %s1073_s29 = sshll.u32 %s1786_s16, 4  ;;  %s2037_s30 = scalar_lea.hbm %s2102_s8, %s2013_s27  ;;  %s1074_s29 = int_to_ptr.vmem [resolvable:$true] %s1073_s29 }
 0x400   : > { %s1542_s12 = scalar_lea.vmem %s1074_s29, 128  ;;  %s1670_s0 = smov [#allocation8]  }
 0x401   : > { %p1543_p11 = scmp.ne.s32.totalorder %s1074_s29, %s1542_s12  ;;  %s1544_s15 = sshll.u32 %s1670_s0, 4  ;;  %s1545_s15 = int_to_ptr.vmem [resolvable:$false] %s1544_s15 }
 0x402   : > { %s1546_s19 = scalar_lea.vmem %s1545_s15, 256  ;;  %p1547_p12 = scmp.lt.s32.totalorder %s1074_s29, %s1545_s15 }
 0x403   : > { %p1548_p13 = scmp.lt.s32.totalorder %s1546_s19, %s1542_s12 }
 0x405   : > { %p1549_p0 = por %p1548_p13, %p1547_p12 }
 0x407   : > { %p1550_p1 = pnand %p1549_p0, %p1543_p11 }
 0x409   : > { %1553 = shalt.err (!%p1550_p1)
}
 0x40a   : > { %s1554_s25 = scalar_lea.hbm %s1071_s28, 128  ;;  %s1556_s20 = scalar_lea.hbm %s2100_s6, 384 }
 0x40b   : > { %p1555_p2 = scmp.ne.s32.totalorder %s1071_s28, %s1554_s25  ;;  %p1557_p3 = scmp.lt.u32.totalorder %s1071_s28, %s2100_s6 }
 0x40c   : > { %p1558_p4 = scmp.lt.u32.totalorder %s1556_s20, %s1554_s25  ;;  %p1560_p6 = scmp.lt.u32.totalorder %s1554_s25, %s1071_s28 }
 0x40e   : > { %p1559_p5 = por %p1558_p4, %p1557_p3 }
 0x410   : > { %p1561_p7 = por %p1560_p6, %p1559_p5 }
 0x412   : > { %p1562_p8 = pnand %p1561_p7, %p1555_p2 }
 0x414   : > { %1565 = shalt.err (!%p1562_p8)
}
 0x415   : > { %s2114_s17 = scalar_lea.sflag [#allocation9], %s1776_s13  ;;  %s1093_s23 = sshll.u32 %s1792_s21, 4  ;;  %s1094_s23 = int_to_ptr.vmem [resolvable:$true] %s1093_s23 }
 0x416   : > { %1076 = dma.vmem_to_hbm [thread:$0]  %s1074_s29, 128, %s1071_s28, %s2114_s17  }
 0x417   : > { %s2052_s15 = scalar_lea.hbm %s2103_s9, %s2013_s27  ;;  %s1103_s19 = sshll.u32 %s1795_s24, 4  ;;  %s1104_s19 = int_to_ptr.vmem [resolvable:$true] %s1103_s19 }
 0x418   : > { %s1566_s16 = scalar_lea.vmem %s1094_s23, 128  ;;  %s1671_s25 = smov [#allocation12]  }
 0x419   : > { %p1567_p9 = scmp.ne.s32.totalorder %s1094_s23, %s1566_s16  ;;  %s1568_s18 = sshll.u32 %s1671_s25, 4  ;;  %s1569_s18 = int_to_ptr.vmem [resolvable:$false] %s1568_s18 }
 0x41a   : > { %s1570_s20 = scalar_lea.vmem %s1569_s18, 256  ;;  %p1571_p10 = scmp.lt.s32.totalorder %s1094_s23, %s1569_s18 }
 0x41b   : > { %p1572_p11 = scmp.lt.s32.totalorder %s1570_s20, %s1566_s16 }
 0x41d   : > { %p1573_p12 = por %p1572_p11, %p1571_p10 }
 0x41f   : > { %p1574_p13 = pnand %p1573_p12, %p1567_p9 }
 0x421   : > { %1577 = shalt.err (!%p1574_p13)
}
 0x422   : > { %s1578_s21 = scalar_lea.hbm %s2037_s30, 128  ;;  %s1580_s24 = scalar_lea.hbm %s2102_s8, 384 }
 0x423   : > { %p1579_p0 = scmp.ne.s32.totalorder %s2037_s30, %s1578_s21  ;;  %p1581_p1 = scmp.lt.u32.totalorder %s2037_s30, %s2102_s8 }
 0x424   : > { %p1582_p2 = scmp.lt.u32.totalorder %s1580_s24, %s1578_s21  ;;  %p1584_p4 = scmp.lt.u32.totalorder %s1578_s21, %s2037_s30 }
 0x426   : > { %p1583_p3 = por %p1582_p2, %p1581_p1 }
 0x428   : > { %p1585_p5 = por %p1584_p4, %p1583_p3 }
 0x42a   : > { %p1586_p6 = pnand %p1585_p5, %p1579_p0 }
 0x42c   : > { %1589 = shalt.err (!%p1586_p6)
}
 0x42d   : > { %s2115_s22 = scalar_lea.sflag [#allocation11], %s1776_s13  ;;  %s1590_s17 = scalar_lea.vmem %s1104_s19, 128 }
 0x42e   : > { %1096 = dma.vmem_to_hbm [thread:$0]  %s1094_s23, 128, %s2037_s30, %s2115_s22  }
 0x42f   : > { %p1591_p7 = scmp.ne.s32.totalorder %s1104_s19, %s1590_s17  ;;  %s1672_s12 = smov [#allocation13]  }
 0x430   : > { %s1592_s0 = sshll.u32 %s1672_s12, 4  ;;  %s1593_s0 = int_to_ptr.vmem [resolvable:$false] %s1592_s0 }
 0x431   : > { %s1594_s16 = scalar_lea.vmem %s1593_s0, 256  ;;  %p1595_p8 = scmp.lt.s32.totalorder %s1104_s19, %s1593_s0 }
 0x432   : > { %p1596_p9 = scmp.lt.s32.totalorder %s1594_s16, %s1590_s17 }
 0x434   : > { %p1597_p10 = por %p1596_p9, %p1595_p8 }
 0x436   : > { %p1598_p11 = pnand %p1597_p10, %p1591_p7 }
 0x438   : > { %1601 = shalt.err (!%p1598_p11)
}
 0x439   : > { %s1602_s25 = scalar_lea.hbm %s2052_s15, 128  ;;  %s1604_s23 = scalar_lea.hbm %s2103_s9, 384 }
 0x43a   : > { %p1603_p12 = scmp.ne.s32.totalorder %s2052_s15, %s1602_s25  ;;  %p1605_p13 = scmp.lt.u32.totalorder %s2052_s15, %s2103_s9 }
 0x43b   : > { %p1606_p0 = scmp.lt.u32.totalorder %s1604_s23, %s1602_s25  ;;  %p1608_p2 = scmp.lt.u32.totalorder %s1602_s25, %s2052_s15 }
 0x43d   : > { %p1607_p1 = por %p1606_p0, %p1605_p13 }
 0x43f   : > { %p1609_p3 = por %p1608_p2, %p1607_p1 }
 0x441   : > { %p1610_p4 = pnand %p1609_p3, %p1603_p12 }
 0x443   : > { %1613 = shalt.err (!%p1610_p4)
}
 0x444   : > { %s2116_s27 = scalar_lea.sflag [#allocation14], %s1776_s13 }
 0x445   : > { %1106 = dma.vmem_to_hbm [thread:$0]  %s1104_s19, 128, %s2052_s15, %s2116_s27  }
 0x446 PF: > { %p1466_p5 = scmp.ge.s32.totalorder %s1656_s11, 2  ;;  %s2117_s28 = sadd.s32 4294967294, %s1656_s11  }
 0x447   : > { %s1126_s24 = sand.u32 1, %s2117_s28  }
 0x448   : > { %s1127_s29 = scalar_lea.sflag [#allocation9], %s1126_s24 }
 0x449   : > { %1635 = dma.done.wait (%p1466_p5), %s1127_s29, 128  }
 0x44a   : > { %1637 = vsyncadd (%p1466_p5), %s1127_s29, 4294967168  ;;  %s1133_s26 = scalar_lea.sflag [#allocation11], %s1126_s24 }
 0x44b   : > { %1639 = dma.done.wait (%p1466_p5), %s1133_s26, 256  }
 0x44c   : > { %1641 = vsyncadd (%p1466_p5), %s1133_s26, 4294967040  ;;  %s1145_s22 = scalar_lea.sflag [#allocation14], %s1126_s24 }
 0x44d   : > { %1643 = dma.done.wait (%p1466_p5), %s1145_s22, 128  }
 0x44e   : > { %1645 = vsyncadd (%p1466_p5), %s1145_s22, 4294967168  ;;  %s2118_s13 = sld [smem:[#allocation31_spill]]  ;;  %p22_p6 = scmp.ge.s32.totalorder %s1743_s14, 5  }
 0x44f   : > { %s2119_s30 = smov %s1652_s10  ;;  %s2121_s11 = smov %s1743_s14 }
 0x450   :  { %24 = sbr.rel (!%p22_p6) target bundleno = 9 (0x9), region = 382 }
 0x454   : > { %s2120_s10 = smov %s2118_s13 }
 0x457   :  { %1150 = vsyncpa [#allocation9], 1 }
 0x458   :  { %1152 = vsyncpa [#allocation9 + $0x1], 1 }
 0x459   :  { %1153 = vsyncpa [#allocation11], 1 }
 0x45a   :  { %1155 = vsyncpa [#allocation11 + $0x1], 1 }
 0x45b   :  { %1156 = vsyncpa [#allocation14], 1 }
 0x45c   :  { %1158 = vsyncpa [#allocation14 + $0x1], 1 }

// kernel: mi_loss.1
= control target key start
LH: loop header
LB: loop body
LE: loop exit
PB: predicated region body
PF: predicated region fallthrough
CT: control target
= control target key end

     0   :  { %14 = vsyncpa [#allocation3], 0  ;;  %s2202_s0 = inlined_call_operand.vmem [shape: f32[1,2], index: 0, kind: input, shape index: {}]   ;;  %s2203_s1 = inlined_call_operand.vmem [shape: f32[128,32], index: 1, kind: input, shape index: {}, may-alias: {1,2}]   ;;  %s2204_s2 = inlined_call_operand.vmem [shape: f32[128,32], index: 2, kind: input, shape index: {}, may-alias: {1,2}]   ;;  %s2205_s3 = inlined_call_operand.vmem [shape: f32[128,8], index: 3, kind: input, shape index: {}, may-alias: {3,4}]   ;;  %s2206_s4 = inlined_call_operand.vmem [shape: f32[128,8], index: 4, kind: input, shape index: {}, may-alias: {3,4}]   ;;  %s2207_s5 = inlined_call_operand.vmem [shape: f32[128,1], index: 5, kind: input, shape index: {}]   ;;  %s2208_s6 = inlined_call_operand.vmem [shape: f32[1,128], index: 6, kind: input, shape index: {}]   ;;  %s2209_s7 = inlined_call_operand.vmem [shape: f32[128,1], index: 7, kind: input, shape index: {}]   ;;  %s2210_s8 = inlined_call_operand.vmem [shape: f32[1,128], index: 8, kind: input, shape index: {}]   ;;  %s2211_s9 = inlined_call_operand.vmem [shape: f32[3,128,128], index: 9, kind: output, shape index: {}]  }
   0x1   :  { %s21_s11 = sshll.u32 %s2202_s0, 4  ;;  %s22_s11 = int_to_ptr.vmem [resolvable:$true] %s21_s11 }
   0x2   :  { %s1473_s12 = scalar_lea.vmem %s22_s11, 16  ;;  %p1478_p1 = scmp.lt.s32.totalorder %s22_s11, %s22_s11 }
   0x3   :  { %p1474_p0 = scmp.ne.s32.totalorder %s22_s11, %s1473_s12  ;;  %p1479_p2 = scmp.lt.s32.totalorder %s1473_s12, %s1473_s12 }
   0x5   :  { %p1480_p3 = por %p1479_p2, %p1478_p1 }
   0x7   :  { %p1481_p4 = pnand %p1480_p3, %p1474_p0 }
   0x9   :  { %1484 = shalt.err (!%p1481_p4)
}
   0xa   :  { %s1487_s13 = smov [#allocation2]  }
   0xb   :  { %24 = dma.vmem_to_smem %s22_s11, 16, %s1487_s13, [#allocation3]  }
   0xc   :  { %1485 = dma.done.wait [#allocation3], 16  }
   0xd   :  { %1486 = vsyncadd [#allocation3], 4294967280 }
   0xe   :  { %44 = sfence }
   0xf   :  { %v63_v0 = vld [vmem:[%s2204_s2] sm:$0xff]  ;;  %v64_v1 = vld [vmem:[%s2204_s2 + $0x8] sm:$0xff]  ;;  %vm111_vm0 = vcmask 261120   ;;  %vm353_vm1 = vcmask 64512   ;;  %v65_v6 = vld [vmem:[%s2204_s2 + $0x10] sm:$0xff]  ;;  %v1488_v7 = vmov 0  }
  0x10   :  { %v95_v2 = vld [vmem:[%s2206_s4] sm:$0xff]  ;;  %v1309_v3 = vpack.c.bf16 %v64_v1, %v63_v0  ;;  %vm1553_vm2 = vmpackc.low %vm111_vm0, %vm111_vm0  ;;  %v96_v5 = vld [vmem:[%s2206_s4 + $0x8] sm:$0xff]  ;;  %1408 = vset.pattern.permute.xlu1 %v1488_v7  ;;  %1407 = vset.pattern.permute.xlu0 %v1488_v7 }
  0x11   :  { %v1357_v8 = vpack.c.bf16 %v96_v5, %v95_v2  ;;  %vm1565_vm3 = vmpackc.low %vm353_vm1, %vm353_vm1  ;;  %v66_v10 = vld [vmem:[%s2204_s2 + $0x18] sm:$0xff]  ;;  %v97_v11 = vld [vmem:[%s2206_s4 + $0x10] sm:$0xff] }
  0x12   :  { %1311 = vmatprep.subr.msk.bf16.mxu0 %vm1553_vm2, %v1309_v3  ;;  %v1315_v12 = vpack.c.bf16 %v66_v10, %v65_v6  ;;  %v98_v13 = vld [vmem:[%s2206_s4 + $0x18] sm:$0xff]  ;;  %v67_v15 = vld [vmem:[%s2204_s2 + $0x20] sm:$0xff]  ;;  %v68_v16 = vld [vmem:[%s2204_s2 + $0x28] sm:$0xff] }
  0x13   :  { %1359 = vmatprep.subr.msk.bf16.mxu1 %vm1565_vm3, %v1357_v8  ;;  %1314 = vmatpush3.bf16.xpose.msk.msra.mxu0 %vm1553_vm2, %v1309_v3  ;;  %v1363_v14 = vpack.c.bf16 %v98_v13, %v97_v11  ;;  %v99_v17 = vld [vmem:[%s2206_s4 + $0x20] sm:$0xff]  ;;  %v100_v18 = vld [vmem:[%s2206_s4 + $0x28] sm:$0xff]  ;;  %v1321_v19 = vpack.c.bf16 %v68_v16, %v67_v15  ;;  %v614_v21 = vld [vmem:[%s2207_s5 + $0x10] sm:$0xff] }
  0x14   :  { %1362 = vmatpush3.bf16.xpose.msk.msra.mxu1 %vm1565_vm3, %v1357_v8  ;;  %1317 = vmatprep.subr.msk.bf16.mxu0 %vm1553_vm2, %v1315_v12  ;;  %v1369_v20 = vpack.c.bf16 %v100_v18, %v99_v17  ;;  %v612_v22 = vld [vmem:[%s2207_s5] sm:$0xff]  ;;  %v615_v24 = vld [vmem:[%s2207_s5 + $0x18] sm:$0xff]  ;;  %v69_v26 = vld [vmem:[%s2204_s2 + $0x30] sm:$0xff] }
  0x15   :  { %1365 = vmatprep.subr.msk.bf16.mxu1 %vm1565_vm3, %v1363_v14  ;;  %640 = vperm.xlu1 %1408, %v614_v21   ;;  %v47_v23 = vld [vmem:[%s2203_s1] sm:$0xff]  ;;  %v70_v27 = vld [vmem:[%s2204_s2 + $0x38] sm:$0xff]  ;;  %v101_v28 = vld [vmem:[%s2206_s4 + $0x30] sm:$0xff] }
  0x16   :  { %v79_v25 = vld [vmem:[%s2205_s3] sm:$0xff]  ;;  %630 = vperm.xlu0 %1407, %v612_v22   ;;  %v102_v29 = vld [vmem:[%s2206_s4 + $0x38] sm:$0xff]  ;;  %v613_v30 = vld [vmem:[%s2207_s5 + $0x8] sm:$0xff]  ;;  %1229 = vmatprep.mubr.msk.f32.mxu0 %vm111_vm0, %v47_v23  ;;  %v1327_v31 = vpack.c.bf16 %v70_v27, %v69_v26 }
  0x17   :  { %1285 = vmatprep.mubr.msk.f32.mxu1 %vm353_vm1, %v79_v25  ;;  %v617_v32 = vld [vmem:[%s2207_s5 + $0x28] sm:$0xff]  ;;  %v1375_v33 = vpack.c.bf16 %v102_v29, %v101_v28  ;;  %v616_v34 = vld [vmem:[%s2207_s5 + $0x20] sm:$0xff]  ;;  %v619_v35 = vld [vmem:[%s2207_s5 + $0x38] sm:$0xff] }
  0x18   :  { %v71_v36 = vld [vmem:[%s2204_s2 + $0x40] sm:$0xff]  ;;  %v72_v37 = vld [vmem:[%s2204_s2 + $0x48] sm:$0xff]  ;;  %v618_v40 = vld [vmem:[%s2207_s5 + $0x30] sm:$0xff] }
  0x19   :  { %645 = vperm.xlu1 %1408, %v615_v24   ;;  %v103_v38 = vld [vmem:[%s2206_s4 + $0x40] sm:$0xff]  ;;  %v104_v39 = vld [vmem:[%s2206_s4 + $0x48] sm:$0xff]  ;;  %v1333_v41 = vpack.c.bf16 %v72_v37, %v71_v36  ;;  %v623_v45 = vld [vmem:[%s2207_s5 + $0x58] sm:$0xff] }
  0x1a   :  { %635 = vperm.xlu0 %1407, %v613_v30   ;;  %v621_v42 = vld [vmem:[%s2207_s5 + $0x48] sm:$0xff]  ;;  %v1381_v43 = vpack.c.bf16 %v104_v39, %v103_v38  ;;  %v620_v44 = vld [vmem:[%s2207_s5 + $0x40] sm:$0xff]  ;;  %v73_v46 = vld [vmem:[%s2204_s2 + $0x50] sm:$0xff] }
  0x1b   :  { %1320 = vmatpush3.bf16.xpose.msk.msra.mxu0 %vm1553_vm2, %v1315_v12  ;;  %v74_v47 = vld [vmem:[%s2204_s2 + $0x58] sm:$0xff]  ;;  %v105_v48 = vld [vmem:[%s2206_s4 + $0x50] sm:$0xff]  ;;  %v625_v52 = vld [vmem:[%s2207_s5 + $0x68] sm:$0xff] }
  0x1c   :  { %1368 = vmatpush3.bf16.xpose.msk.msra.mxu1 %vm1565_vm3, %v1363_v14  ;;  %1323 = vmatprep.subr.msk.bf16.mxu0 %vm1553_vm2, %v1321_v19  ;;  %v106_v49 = vld [vmem:[%s2206_s4 + $0x58] sm:$0xff]  ;;  %v622_v50 = vld [vmem:[%s2207_s5 + $0x50] sm:$0xff]  ;;  %v1339_v51 = vpack.c.bf16 %v74_v47, %v73_v46  ;;  %v624_v54 = vld [vmem:[%s2207_s5 + $0x60] sm:$0xff] }
  0x1d   :  { %1371 = vmatprep.subr.msk.bf16.mxu1 %vm1565_vm3, %v1369_v20  ;;  %655 = vperm.xlu1 %1408, %v617_v32   ;;  %v1387_v53 = vpack.c.bf16 %v106_v49, %v105_v48  ;;  %v627_v55 = vld [vmem:[%s2207_s5 + $0x78] sm:$0xff]  ;;  %v75_v56 = vld [vmem:[%s2204_s2 + $0x60] sm:$0xff]  ;;  %v76_v57 = vld [vmem:[%s2204_s2 + $0x68] sm:$0xff] }
  0x1e   :  { %650 = vperm.xlu0 %1407, %v616_v34   ;;  %v107_v58 = vld [vmem:[%s2206_s4 + $0x60] sm:$0xff]  ;;  %v108_v59 = vld [vmem:[%s2206_s4 + $0x68] sm:$0xff]  ;;  %v626_v60 = vld [vmem:[%s2207_s5 + $0x70] sm:$0xff]  ;;  %v1345_v61 = vpack.c.bf16 %v76_v57, %v75_v56 }
  0x1f   :  { %v797_v62 = vld [vmem:[%s2209_s7 + $0x8] sm:$0xff]  ;;  %v1393_v63 = vpack.c.bf16 %v108_v59, %v107_v58  ;;  %v796_v0 = vld [vmem:[%s2209_s7] sm:$0xff]  ;;  %v799_v1 = vld [vmem:[%s2209_s7 + $0x18] sm:$0xff] }
  0x20   :  { %v77_v2 = vld [vmem:[%s2204_s2 + $0x70] sm:$0xff]  ;;  %v78_v3 = vld [vmem:[%s2204_s2 + $0x78] sm:$0xff]  ;;  %v801_v10 = vld [vmem:[%s2209_s7 + $0x28] sm:$0xff] }
  0x21   :  { %665 = vperm.xlu1 %1408, %v619_v35   ;;  %v109_v5 = vld [vmem:[%s2206_s4 + $0x70] sm:$0xff]  ;;  %v110_v6 = vld [vmem:[%s2206_s4 + $0x78] sm:$0xff]  ;;  %v1351_v8 = vpack.c.bf16 %v78_v3, %v77_v2  ;;  %v800_v12 = vld [vmem:[%s2209_s7 + $0x20] sm:$0xff] }
  0x22   :  { %660 = vperm.xlu0 %1407, %v618_v40   ;;  %v798_v7 = vld [vmem:[%s2209_s7 + $0x10] sm:$0xff]  ;;  %v1399_v11 = vpack.c.bf16 %v110_v6, %v109_v5  ;;  %v803_v13 = vld [vmem:[%s2209_s7 + $0x38] sm:$0xff]  ;;  %v805_v15 = vld [vmem:[%s2209_s7 + $0x48] sm:$0xff] }
  0x23   :  { %1326 = vmatpush3.bf16.xpose.msk.msra.mxu0 %vm1553_vm2, %v1321_v19  ;;  %v802_v14 = vld [vmem:[%s2209_s7 + $0x30] sm:$0xff]  ;;  %v804_v16 = vld [vmem:[%s2209_s7 + $0x40] sm:$0xff]  ;;  %v807_v17 = vld [vmem:[%s2209_s7 + $0x58] sm:$0xff] }
  0x24   :  { %1374 = vmatpush3.bf16.xpose.msk.msra.mxu1 %vm1565_vm3, %v1369_v20  ;;  %1329 = vmatprep.subr.msk.bf16.mxu0 %vm1553_vm2, %v1327_v31  ;;  %v806_v18 = vld [vmem:[%s2209_s7 + $0x50] sm:$0xff]  ;;  %v48_v19 = vld [vmem:[%s2203_s1 + $0x8] sm:$0xff]  ;;  %v808_v22 = vld [vmem:[%s2209_s7 + $0x60] sm:$0xff] }
  0x25   :  { %1377 = vmatprep.subr.msk.bf16.mxu1 %vm1565_vm3, %v1375_v33  ;;  %675 = vperm.xlu1 %1408, %v621_v42   ;;  %v80_v4 = vld [vmem:[%s2205_s3 + $0x8] sm:$0xff]  ;;  %v49_v9 = vld [vmem:[%s2203_s1 + $0x10] sm:$0xff]  ;;  %v50_v23 = vld [vmem:[%s2203_s1 + $0x18] sm:$0xff] }
  0x26   :  { %670 = vperm.xlu0 %1407, %v620_v44   ;;  %v81_v20 = vld [vmem:[%s2205_s3 + $0x10] sm:$0xff]  ;;  %v809_v21 = vld [vmem:[%s2209_s7 + $0x68] sm:$0xff]  ;;  %v82_v24 = vld [vmem:[%s2205_s3 + $0x18] sm:$0xff] }
  0x27   :  { %v51_v25 = vld [vmem:[%s2203_s1 + $0x20] sm:$0xff]  ;;  %v811_v27 = vld [vmem:[%s2209_s7 + $0x78] sm:$0xff]  ;;  %v810_v28 = vld [vmem:[%s2209_s7 + $0x70] sm:$0xff] }
  0x28   :  { %v83_v26 = vld [vmem:[%s2205_s3 + $0x20] sm:$0xff]  ;;  %v52_v29 = vld [vmem:[%s2203_s1 + $0x28] sm:$0xff]  ;;  %v85_v32 = vld [vmem:[%s2205_s3 + $0x30] sm:$0xff] }
  0x29   :  { %685 = vperm.xlu1 %1408, %v623_v45   ;;  %v84_v30 = vld [vmem:[%s2205_s3 + $0x28] sm:$0xff]  ;;  %v86_v34 = vld [vmem:[%s2205_s3 + $0x38] sm:$0xff]  ;;  %v55_v35 = vld [vmem:[%s2203_s1 + $0x40] sm:$0xff] }
  0x2a   :  { %680 = vperm.xlu0 %1407, %v622_v50   ;;  %v87_v36 = vld [vmem:[%s2205_s3 + $0x40] sm:$0xff]  ;;  %v56_v37 = vld [vmem:[%s2203_s1 + $0x48] sm:$0xff]  ;;  %v57_v39 = vld [vmem:[%s2203_s1 + $0x50] sm:$0xff] }
  0x2b   :  { %1332 = vmatpush3.bf16.xpose.msk.msra.mxu0 %vm1553_vm2, %v1327_v31  ;;  %v53_v31 = vld [vmem:[%s2203_s1 + $0x30] sm:$0xff]  ;;  %v88_v38 = vld [vmem:[%s2205_s3 + $0x48] sm:$0xff]  ;;  %v90_v42 = vld [vmem:[%s2205_s3 + $0x58] sm:$0xff] }
  0x2c   :  { %1380 = vmatpush3.bf16.xpose.msk.msra.mxu1 %vm1565_vm3, %v1375_v33  ;;  %1335 = vmatprep.subr.msk.bf16.mxu0 %vm1553_vm2, %v1333_v41  ;;  %v54_v33 = vld [vmem:[%s2203_s1 + $0x38] sm:$0xff]  ;;  %v89_v40 = vld [vmem:[%s2205_s3 + $0x50] sm:$0xff]  ;;  %v91_v44 = vld [vmem:[%s2205_s3 + $0x60] sm:$0xff] }
  0x2d   :  { %1383 = vmatprep.subr.msk.bf16.mxu1 %vm1565_vm3, %v1381_v43  ;;  %695 = vperm.xlu1 %1408, %v625_v52   ;;  %v60_v45 = vld [vmem:[%s2203_s1 + $0x68] sm:$0xff]  ;;  %v61_v47 = vld [vmem:[%s2203_s1 + $0x70] sm:$0xff]  ;;  %v62_v49 = vld [vmem:[%s2203_s1 + $0x78] sm:$0xff] }
  0x2e   :  { %690 = vperm.xlu0 %1407, %v624_v54   ;;  %v92_v46 = vld [vmem:[%s2205_s3 + $0x68] sm:$0xff]  ;;  %v93_v48 = vld [vmem:[%s2205_s3 + $0x70] sm:$0xff]  ;;  %v94_v50 = vld [vmem:[%s2205_s3 + $0x78] sm:$0xff]  ;;  %s1034_s3 = sld [smem:[#allocation2 + $0x1]] }
  0x31   :  { %705 = vperm.xlu1 %1408, %v627_v55  }
  0x32   :  { %700 = vperm.xlu0 %1407, %v626_v60  }
  0x33   :  { %1338 = vmatpush3.bf16.xpose.msk.msra.mxu0 %vm1553_vm2, %v1333_v41  ;;  %v58_v41 = vld [vmem:[%s2203_s1 + $0x58] sm:$0xff] }
  0x34   :  { %1386 = vmatpush3.bf16.xpose.msk.msra.mxu1 %vm1565_vm3, %v1381_v43  ;;  %1341 = vmatprep.subr.msk.bf16.mxu0 %vm1553_vm2, %v1339_v51  ;;  %v59_v43 = vld [vmem:[%s2203_s1 + $0x60] sm:$0xff]  ;;  %s45_s1 = sld [smem:[#allocation2]] }
  0x35   :  { %1389 = vmatprep.subr.msk.bf16.mxu1 %vm1565_vm3, %v1387_v53  ;;  %819 = vperm.xlu1 %1408, %v797_v62  }
  0x36   :  { %814 = vperm.xlu0 %1407, %v796_v0  }
  0x39   :  { %829 = vperm.xlu1 %1408, %v799_v1  }
  0x3a   :  { %824 = vperm.xlu0 %1407, %v798_v7   ;;  %v1962_v6 = vstv %s45_s1  ;;  %v1964_v7 = vstv %s1034_s3 }
  0x3b   :  { %1344 = vmatpush3.bf16.xpose.msk.msra.mxu0 %vm1553_vm2, %v1339_v51 }
  0x3c   :  { %1392 = vmatpush3.bf16.xpose.msk.msra.mxu1 %vm1565_vm3, %v1387_v53  ;;  %1347 = vmatprep.subr.msk.bf16.mxu0 %vm1553_vm2, %v1345_v61 }
  0x3d   :  { %1395 = vmatprep.subr.msk.bf16.mxu1 %vm1565_vm3, %v1393_v63  ;;  %839 = vperm.xlu1 %1408, %v801_v10  }
  0x3e   :  { %834 = vperm.xlu0 %1407, %v800_v12  }
  0x41   :  { %849 = vperm.xlu1 %1408, %v803_v13  }
  0x42   :  { %844 = vperm.xlu0 %1407, %v802_v14   ;;  %v1970_v14 = vld [vmem:[%s2208_s6] ss:$0 sm:$0xff] }
  0x43   :  { %1350 = vmatpush3.bf16.xpose.msk.msra.mxu0 %vm1553_vm2, %v1345_v61 }
  0x44   :  { %1398 = vmatpush3.bf16.xpose.msk.msra.mxu1 %vm1565_vm3, %v1393_v63  ;;  %1353 = vmatprep.subr.msk.bf16.mxu0 %vm1553_vm2, %v1351_v8 }
  0x45   :  { %1401 = vmatprep.subr.msk.bf16.mxu1 %vm1565_vm3, %v1399_v11  ;;  %859 = vperm.xlu1 %1408, %v805_v15  }
  0x46   :  { %854 = vperm.xlu0 %1407, %v804_v16  }
  0x49   :  { %869 = vperm.xlu1 %1408, %v807_v17  }
  0x4a   :  { %864 = vperm.xlu0 %1407, %v806_v18  }
  0x4b   :  { %1356 = vmatpush3.bf16.xpose.msk.msra.mxu0 %vm1553_vm2, %v1351_v8 }
  0x4c   :  { %1404 = vmatpush3.bf16.xpose.msk.msra.mxu1 %vm1565_vm3, %v1399_v11 }
  0x4d   :  { %879 = vperm.xlu1 %1408, %v809_v21  }
  0x4e   :  { %874 = vperm.xlu0 %1407, %v808_v22  }
  0x51   :  { %889 = vperm.xlu1 %1408, %v811_v27  }
  0x52   :  { %1230 = vmatmul.mubr.msk.f32.vlgmr.msra.gmra.mrb[0].mxu0 %vm111_vm0, %v48_v19  ;;  %884 = vperm.xlu0 %1407, %v810_v28   ;;  %v1977_v19 = vld [vmem:[%s2210_s8] ss:$0 sm:$0xff] }
  0x53   :  { %1286 = vmatmul.mubr.msk.f32.vlgmr.msra.gmra.mrb[0].mxu1 %vm353_vm1, %v80_v4  ;;  %1232 = vmatprep.mubr.msk.f32.mxu0 %vm111_vm0, %v49_v9 }
  0x54   :  { %1288 = vmatprep.mubr.msk.f32.mxu1 %vm353_vm1, %v81_v20 }
  0x56   :  { %1233 = vmatmul.mubr.msk.f32.gmra.mrb[2].mxu0 %vm111_vm0, %v50_v23 }
  0x57   :  { %1289 = vmatmul.mubr.msk.f32.gmra.mrb[2].mxu1 %vm353_vm1, %v82_v24  ;;  %1235 = vmatprep.mubr.msk.f32.mxu0 %vm111_vm0, %v51_v25 }
  0x58   :  { %1291 = vmatprep.mubr.msk.f32.mxu1 %vm353_vm1, %v83_v26 }
  0x5a   :  { %1236 = vmatmul.mubr.msk.f32.gmra.mrb[4].mxu0 %vm111_vm0, %v52_v29 }
  0x5b   :  { %1292 = vmatmul.mubr.msk.f32.gmra.mrb[4].mxu1 %vm353_vm1, %v84_v30  ;;  %1238 = vmatprep.mubr.msk.f32.mxu0 %vm111_vm0, %v53_v31 }
  0x5c   :  { %1294 = vmatprep.mubr.msk.f32.mxu1 %vm353_vm1, %v85_v32 }
  0x5e   :  { %1239 = vmatmul.mubr.msk.f32.gmra.mrb[6].mxu0 %vm111_vm0, %v54_v33 }
  0x5f   :  { %1295 = vmatmul.mubr.msk.f32.gmra.mrb[6].mxu1 %vm353_vm1, %v86_v34  ;;  %1241 = vmatprep.mubr.msk.f32.mxu0 %vm111_vm0, %v55_v35 }
  0x60   :  { %1297 = vmatprep.mubr.msk.f32.mxu1 %vm353_vm1, %v87_v36 }
  0x62   :  { %1242 = vmatmul.mubr.msk.f32.gmra.mrb[8].mxu0 %vm111_vm0, %v56_v37 }
  0x63   :  { %1298 = vmatmul.mubr.msk.f32.gmra.mrb[8].mxu1 %vm353_vm1, %v88_v38  ;;  %1244 = vmatprep.mubr.msk.f32.mxu0 %vm111_vm0, %v57_v39 }
  0x64   :  { %1300 = vmatprep.mubr.msk.f32.mxu1 %vm353_vm1, %v89_v40 }
  0x66   :  { %1245 = vmatmul.mubr.msk.f32.gmra.mrb[10].mxu0 %vm111_vm0, %v58_v41 }
  0x67   :  { %1301 = vmatmul.mubr.msk.f32.gmra.mrb[10].mxu1 %vm353_vm1, %v90_v42  ;;  %1247 = vmatprep.mubr.msk.f32.mxu0 %vm111_vm0, %v59_v43 }
  0x68   :  { %1303 = vmatprep.mubr.msk.f32.mxu1 %vm353_vm1, %v91_v44 }
  0x6a   :  { %1248 = vmatmul.mubr.msk.f32.gmra.mrb[12].mxu0 %vm111_vm0, %v60_v45 }
  0x6b   :  { %1304 = vmatmul.mubr.msk.f32.gmra.mrb[12].mxu1 %vm353_vm1, %v92_v46  ;;  %1250 = vmatprep.mubr.msk.f32.mxu0 %vm111_vm0, %v61_v47 }
  0x6c   :  { %1306 = vmatprep.mubr.msk.f32.mxu1 %vm353_vm1, %v93_v48 }
  0x6e   :  { %1251 = vmatmul.mubr.msk.f32.gmra.mrb[14].mxu0 %vm111_vm0, %v62_v49 }
  0x6f   :  { %1307 = vmatmul.mubr.msk.f32.gmra.mrb[14].mxu1 %vm353_vm1, %v94_v50 }
  0x94   :  { %v641_v51 = vpop.permute.xlu1 %640 }
  0x95   :  { %v631_v52 = vpop.permute.xlu0 %630 }
  0x98   :  { %v646_v53 = vpop.permute.xlu1 %645 }
  0x99   :  { %v636_v54 = vpop.permute.xlu0 %635 }
  0x9c   :  { %v1938_v55 = vpop.permute.xlu1 %655 }
  0x9d   :  { %v1940_v56 = vpop.permute.xlu0 %650 }
  0xa0   :  { %v1942_v57 = vpop.permute.xlu1 %665 }
  0xa1   :  { %v1944_v58 = vpop.permute.xlu0 %660 }
  0xa4   :  { %v1946_v59 = vpop.permute.xlu1 %675 }
  0xa5   :  { %v1948_v60 = vpop.permute.xlu0 %670 }
  0xa8   :  { %v1950_v61 = vpop.permute.xlu1 %685 }
  0xa9   :  { %v1952_v62 = vpop.permute.xlu0 %680 }
  0xac   :  { %v1954_v63 = vpop.permute.xlu1 %695 }
  0xad   :  { %v1956_v0 = vpop.permute.xlu0 %690 }
  0xb0   :  { %v1958_v1 = vpop.permute.xlu1 %705 }
  0xb1   :  { %v1960_v2 = vpop.permute.xlu0 %700 }
  0xb4   :  { %v820_v3 = vpop.permute.xlu1 %819 }
  0xb5   :  { %v815_v5 = vpop.permute.xlu0 %814 }
  0xb8   :  { %v830_v13 = vpop.permute.xlu1 %829 }
  0xb9   :  { %v825_v9 = vpop.permute.xlu0 %824 }
  0xbc   :  { %v840_v37 = vpop.permute.xlu1 %839 }
  0xbd   :  { %v835_v48 = vpop.permute.xlu0 %834 }
 0x125   :  { %v1231_v8 = vpop.f32.mrb[0].mxu0 }
 0x126   :  { %v597_v10 = vmul.f32 %v1231_v8, %v1962_v6  ;;  %v1287_v11 = vpop.f32.mrb[0].mxu1  ;;  %v274_v12 = vpop.f32.mrb[1].mxu0 }
 0x127   :  { %v781_v15 = vmul.f32 %v1287_v11, %v1964_v7  ;;  %v596_v16 = vmul.f32 %v1962_v6, %v274_v12  ;;  %v516_v17 = vpop.f32.mrb[1].mxu1 }
 0x128   :  { %v709_v18 = vadd.f32 %v636_v54, %v597_v10  ;;  %v780_v4 = vmul.f32 %v1964_v7, %v516_v17 }
 0x129   :  { %v893_v20 = vadd.f32 %v820_v3, %v781_v15  ;;  %v708_v21 = vadd.f32 %v631_v52, %v596_v16  ;;  %v1234_v22 = vpop.f32.mrb[2].mxu0 }
 0x12a   :  { %v732_v23 = vadd.f32 %v1970_v14, %v709_v18  ;;  %v892_v24 = vadd.f32 %v815_v5, %v780_v4  ;;  %v599_v25 = vmul.f32 %v1234_v22, %v1962_v6  ;;  %v1290_v26 = vpop.f32.mrb[2].mxu1  ;;  %v284_v27 = vpop.f32.mrb[3].mxu0 }
 0x12b   :  { %v916_v28 = vadd.f32 %v1977_v19, %v893_v20  ;;  %v731_v29 = vadd.f32 %v1970_v14, %v708_v21  ;;  %v783_v30 = vmul.f32 %v1290_v26, %v1964_v7  ;;  %v598_v31 = vmul.f32 %v1962_v6, %v284_v27  ;;  %v526_v32 = vpop.f32.mrb[3].mxu1  ;;  %v850_v18 = vpop.permute.xlu1 %849 }
 0x12c   :  { %v749_v33 = vmul.f32 1.442695, %v732_v23  ;;  %v915_v34 = vadd.f32 %v1977_v19, %v892_v24  ;;  %v711_v35 = vadd.f32 %v646_v53, %v599_v25  ;;  %v782_v36 = vmul.f32 %v1964_v7, %v526_v32  ;;  %v845_v24 = vpop.permute.xlu0 %844 }
 0x12d   :  { %v933_v38 = vmul.f32 1.442695, %v916_v28  ;;  %v747_v39 = vmul.f32 1.442695, %v731_v29  ;;  %v895_v40 = vadd.f32 %v830_v13, %v783_v30  ;;  %v710_v41 = vadd.f32 %v641_v51, %v598_v31  ;;  %v1237_v42 = vpop.f32.mrb[4].mxu0 }
 0x12e   :  { %1409 = vpow2.f32 %v749_v33  ;;  %v931_v43 = vmul.f32 1.442695, %v915_v34  ;;  %v734_v44 = vadd.f32 %v1970_v14, %v711_v35  ;;  %v894_v45 = vadd.f32 %v825_v9, %v782_v36  ;;  %v1293_v46 = vpop.f32.mrb[4].mxu1  ;;  %v294_v47 = vpop.f32.mrb[5].mxu0 }
 0x12f   :  { %1411 = vpow2.f32 %v933_v38  ;;  %v918_v49 = vadd.f32 %v1977_v19, %v895_v40  ;;  %v733_v50 = vadd.f32 %v1970_v14, %v710_v41  ;;  %v601_v52 = vmul.f32 %v1237_v42, %v1962_v6  ;;  %v536_v53 = vpop.f32.mrb[5].mxu1  ;;  %v860_v42 = vpop.permute.xlu1 %859 }
 0x130   :  { %1413 = vpow2.f32 %v747_v39  ;;  %v753_v54 = vmul.f32 1.442695, %v734_v44  ;;  %v917_v51 = vadd.f32 %v1977_v19, %v894_v45  ;;  %v785_v3 = vmul.f32 %v1293_v46, %v1964_v7 }
 0x131   :  { %1415 = vpow2.f32 %v931_v43  ;;  %v937_v5 = vmul.f32 1.442695, %v918_v49  ;;  %v751_v8 = vmul.f32 1.442695, %v733_v50  ;;  %v713_v10 = vadd.f32 %v1938_v55, %v601_v52  ;;  %v1240_v11 = vpop.f32.mrb[6].mxu0 }
 0x132   :  { %1417 = vpow2.f32 %v753_v54  ;;  %v935_v12 = vmul.f32 1.442695, %v917_v51  ;;  %v897_v13 = vadd.f32 %v840_v37, %v785_v3  ;;  %v600_v15 = vmul.f32 %v1962_v6, %v294_v47  ;;  %v1296_v16 = vpop.f32.mrb[6].mxu1  ;;  %v304_v17 = vpop.f32.mrb[7].mxu0 }
 0x133   :  { %1419 = vpow2.f32 %v937_v5  ;;  %v736_v4 = vadd.f32 %v1970_v14, %v713_v10  ;;  %v784_v9 = vmul.f32 %v1964_v7, %v536_v53  ;;  %v603_v20 = vmul.f32 %v1240_v11, %v1962_v6  ;;  %v546_v21 = vpop.f32.mrb[7].mxu1  ;;  %v855_v51 = vpop.permute.xlu0 %854 }
 0x134   :  { %1421 = vpow2.f32 %v751_v8  ;;  %v920_v55 = vadd.f32 %v1977_v19, %v897_v13  ;;  %v712_v22 = vadd.f32 %v1940_v56, %v600_v15  ;;  %v787_v23 = vmul.f32 %v1296_v16, %v1964_v7 }
 0x135   :  { %1423 = vpow2.f32 %v935_v12  ;;  %v757_v25 = vmul.f32 1.442695, %v736_v4  ;;  %v896_v26 = vadd.f32 %v835_v48, %v784_v9  ;;  %v715_v27 = vadd.f32 %v1942_v57, %v603_v20  ;;  %v1243_v28 = vpop.f32.mrb[8].mxu0 }
 0x136   :  { %v941_v29 = vmul.f32 1.442695, %v920_v55  ;;  %v735_v30 = vadd.f32 %v1970_v14, %v712_v22  ;;  %v899_v31 = vadd.f32 %v850_v18, %v787_v23  ;;  %v602_v32 = vmul.f32 %v1962_v6, %v304_v17  ;;  %v1299_v33 = vpop.f32.mrb[8].mxu1  ;;  %v314_v34 = vpop.f32.mrb[9].mxu0 }
 0x137   :  { %1425 = vpow2.f32 %v757_v25  ;;  %v919_v56 = vadd.f32 %v1977_v19, %v896_v26  ;;  %v738_v35 = vadd.f32 %v1970_v14, %v715_v27  ;;  %v786_v36 = vmul.f32 %v1964_v7, %v546_v21  ;;  %v556_v37 = vpop.f32.mrb[9].mxu1 }
 0x138   :  { %v1410_v38 = vpop.eup %1409  ;;  %1427 = vpow2.f32 %v941_v29  ;;  %v755_v57 = vmul.f32 1.442695, %v735_v30  ;;  %v922_v39 = vadd.f32 %v1977_v19, %v899_v31  ;;  %v714_v40 = vadd.f32 %v1944_v58, %v602_v32  ;;  %v870_v29 = vpop.permute.xlu1 %869 }
 0x139   :  { %v1412_v41 = vpop.eup %1411  ;;  %964 = vst [vmem:[%s2211_s9 + $0x8] sm:$0xff] %v1410_v38  ;;  %v939_v43 = vmul.f32 1.442695, %v919_v56  ;;  %v761_v44 = vmul.f32 1.442695, %v738_v35  ;;  %v898_v45 = vadd.f32 %v845_v24, %v786_v36  ;;  %v605_v46 = vmul.f32 %v1243_v28, %v1962_v6  ;;  %v1246_v47 = vpop.f32.mrb[10].mxu0 }
 0x13a   :  { %v1414_v48 = vpop.eup %1413  ;;  %1102 = vst [vmem:[%s2211_s9 + $0x88] sm:$0xff] %v1412_v41  ;;  %v997_v49 = vmul.f32 %v1412_v41, %v1410_v38  ;;  %1429 = vpow2.f32 %v755_v57  ;;  %v945_v58 = vmul.f32 1.442695, %v922_v39  ;;  %v737_v50 = vadd.f32 %v1970_v14, %v714_v40  ;;  %v1302_v52 = vpop.f32.mrb[10].mxu1 }
 0x13b   :  { %v324_v53 = vpop.f32.mrb[11].mxu0  ;;  %v1416_v54 = vpop.eup %1415  ;;  %963 = vst [vmem:[%s2211_s9] sm:$0xff] %v1414_v48  ;;  %1431 = vpow2.f32 %v939_v43  ;;  %v921_v3 = vadd.f32 %v1977_v19, %v898_v45  ;;  %v717_v5 = vadd.f32 %v1946_v59, %v605_v46  ;;  %v789_v8 = vmul.f32 %v1299_v33, %v1964_v7 }
 0x13c   :  { %v566_v10 = vpop.f32.mrb[11].mxu1  ;;  %v1418_v11 = vpop.eup %1417  ;;  %1118 = vst [vmem:[%s2211_s9 + $0x108] sm:$0xff] %v997_v49  ;;  %1101 = vst [vmem:[%s2211_s9 + $0x80] sm:$0xff] %v1416_v54  ;;  %v996_v12 = vmul.f32 %v1416_v54, %v1414_v48  ;;  %1433 = vpow2.f32 %v761_v44  ;;  %v759_v13 = vmul.f32 1.442695, %v737_v50  ;;  %v604_v15 = vmul.f32 %v1962_v6, %v314_v34 }
 0x13d   :  { %v1420_v16 = vpop.eup %1419  ;;  %966 = vst [vmem:[%s2211_s9 + $0x18] sm:$0xff] %v1418_v11  ;;  %1435 = vpow2.f32 %v945_v58  ;;  %v943_v59 = vmul.f32 1.442695, %v921_v3  ;;  %v740_v17 = vadd.f32 %v1970_v14, %v717_v5  ;;  %v901_v18 = vadd.f32 %v860_v42, %v789_v8  ;;  %v1249_v4 = vpop.f32.mrb[12].mxu0 }
 0x13e   :  { %v1422_v9 = vpop.eup %1421  ;;  %1117 = vst [vmem:[%s2211_s9 + $0x100] sm:$0xff] %v996_v12  ;;  %1104 = vst [vmem:[%s2211_s9 + $0x98] sm:$0xff] %v1420_v16  ;;  %v999_v20 = vmul.f32 %v1420_v16, %v1418_v11  ;;  %1437 = vpow2.f32 %v759_v13  ;;  %v716_v21 = vadd.f32 %v1948_v60, %v604_v15  ;;  %v788_v55 = vmul.f32 %v1964_v7, %v556_v37  ;;  %v1305_v22 = vpop.f32.mrb[12].mxu1 }
 0x13f   :  { %v2043_v23 = vpop.f32.mrb[13].mxu0  ;;  %v1424_v24 = vpop.eup %1423  ;;  %965 = vst [vmem:[%s2211_s9 + $0x10] sm:$0xff] %v1422_v9  ;;  %1439 = vpow2.f32 %v943_v59  ;;  %v765_v25 = vmul.f32 1.442695, %v740_v17  ;;  %v924_v26 = vadd.f32 %v1977_v19, %v901_v18  ;;  %v607_v27 = vmul.f32 %v1246_v47, %v1962_v6 }
 0x140   :  { %v2050_v28 = vpop.f32.mrb[13].mxu1  ;;  %1120 = vst [vmem:[%s2211_s9 + $0x118] sm:$0xff] %v999_v20  ;;  %1103 = vst [vmem:[%s2211_s9 + $0x90] sm:$0xff] %v1424_v24  ;;  %v998_v60 = vmul.f32 %v1424_v24, %v1422_v9  ;;  %v739_v30 = vadd.f32 %v1970_v14, %v716_v21  ;;  %v900_v31 = vadd.f32 %v855_v51, %v788_v55  ;;  %v865_v34 = vpop.permute.xlu0 %864 }
 0x141   :  { %v791_v32 = vmul.f32 %v1302_v52, %v1964_v7  ;;  %v1426_v33 = vpop.eup %1425  ;;  %1441 = vpow2.f32 %v765_v25  ;;  %v949_v56 = vmul.f32 1.442695, %v924_v26  ;;  %v719_v35 = vadd.f32 %v1950_v61, %v607_v27  ;;  %v1252_v37 = vpop.f32.mrb[14].mxu0 }
 0x142   :  { %v606_v36 = vmul.f32 %v1962_v6, %v324_v53  ;;  %v1428_v38 = vpop.eup %1427  ;;  %1119 = vst [vmem:[%s2211_s9 + $0x110] sm:$0xff] %v998_v60  ;;  %968 = vst [vmem:[%s2211_s9 + $0x28] sm:$0xff] %v1426_v33  ;;  %v763_v57 = vmul.f32 1.442695, %v739_v30  ;;  %v923_v39 = vadd.f32 %v1977_v19, %v900_v31  ;;  %v790_v41 = vmul.f32 %v1964_v7, %v566_v10  ;;  %v1308_v42 = vpop.f32.mrb[14].mxu1 }
 0x143   :  { %v903_v40 = vadd.f32 %v870_v29, %v791_v32  ;;  %v344_v61 = vpop.f32.mrb[15].mxu0  ;;  %1106 = vst [vmem:[%s2211_s9 + $0xa8] sm:$0xff] %v1428_v38  ;;  %v1001_v43 = vmul.f32 %v1428_v38, %v1426_v33  ;;  %1443 = vpow2.f32 %v949_v56  ;;  %v742_v44 = vadd.f32 %v1970_v14, %v719_v35  ;;  %v586_v46 = vpop.f32.mrb[15].mxu1 }
 0x144   :  { %v718_v45 = vadd.f32 %v1952_v62, %v606_v36  ;;  %v1430_v47 = vpop.eup %1429  ;;  %1445 = vpow2.f32 %v763_v57  ;;  %v947_v48 = vmul.f32 1.442695, %v923_v39  ;;  %v902_v58 = vadd.f32 %v865_v34, %v790_v41  ;;  %v880_v3 = vpop.permute.xlu1 %879 }
 0x145   :  { %v926_v49 = vadd.f32 %v1977_v19, %v903_v40  ;;  %v1432_v50 = vpop.eup %1431  ;;  %1122 = vst [vmem:[%s2211_s9 + $0x128] sm:$0xff] %v1001_v43  ;;  %967 = vst [vmem:[%s2211_s9 + $0x20] sm:$0xff] %v1430_v47  ;;  %v769_v52 = vmul.f32 1.442695, %v742_v44  ;;  %v609_v62 = vmul.f32 %v1249_v4, %v1962_v6  ;;  %v793_v54 = vmul.f32 %v1305_v22, %v1964_v7  ;;  %v875_v59 = vpop.permute.xlu0 %874 }
 0x146   :  { %v741_v53 = vadd.f32 %v1970_v14, %v718_v45  ;;  %v1434_v51 = vpop.eup %1433  ;;  %1105 = vst [vmem:[%s2211_s9 + $0xa0] sm:$0xff] %v1432_v50  ;;  %v1000_v5 = vmul.f32 %v1432_v50, %v1430_v47  ;;  %1447 = vpow2.f32 %v947_v48  ;;  %v925_v10 = vadd.f32 %v1977_v19, %v902_v58 }
 0x147   :  { %v953_v8 = vmul.f32 1.442695, %v926_v49  ;;  %v1436_v11 = vpop.eup %1435  ;;  %970 = vst [vmem:[%s2211_s9 + $0x38] sm:$0xff] %v1434_v51  ;;  %1449 = vpow2.f32 %v769_v52  ;;  %v721_v13 = vadd.f32 %v1954_v63, %v609_v62  ;;  %v905_v15 = vadd.f32 %v880_v3, %v793_v54 }
 0x148   :  { %v767_v12 = vmul.f32 1.442695, %v741_v53  ;;  %v1438_v16 = vpop.eup %1437  ;;  %1121 = vst [vmem:[%s2211_s9 + $0x120] sm:$0xff] %v1000_v5  ;;  %1108 = vst [vmem:[%s2211_s9 + $0xb8] sm:$0xff] %v1436_v11  ;;  %v1003_v17 = vmul.f32 %v1436_v11, %v1434_v51  ;;  %v951_v18 = vmul.f32 1.442695, %v925_v10  ;;  %v608_v4 = vmul.f32 %v1962_v6, %v2043_v23  ;;  %v890_v29 = vpop.permute.xlu1 %889 }
 0x149   :  { %1451 = vpow2.f32 %v953_v8  ;;  %v1440_v9 = vpop.eup %1439  ;;  %969 = vst [vmem:[%s2211_s9 + $0x30] sm:$0xff] %v1438_v16  ;;  %v744_v63 = vadd.f32 %v1970_v14, %v721_v13  ;;  %v928_v20 = vadd.f32 %v1977_v19, %v905_v15  ;;  %v792_v21 = vmul.f32 %v1964_v7, %v2050_v28  ;;  %v885_v35 = vpop.permute.xlu0 %884 }
 0x14a   :  { %1453 = vpow2.f32 %v767_v12  ;;  %1124 = vst [vmem:[%s2211_s9 + $0x138] sm:$0xff] %v1003_v17  ;;  %1107 = vst [vmem:[%s2211_s9 + $0xb0] sm:$0xff] %v1440_v9  ;;  %v1002_v55 = vmul.f32 %v1440_v9, %v1438_v16  ;;  %v720_v22 = vadd.f32 %v1956_v0, %v608_v4  ;;  %v611_v23 = vmul.f32 %v1252_v37, %v1962_v6 }
 0x14b   :  { %1455 = vpow2.f32 %v951_v18  ;;  %v1442_v24 = vpop.eup %1441  ;;  %v773_v25 = vmul.f32 1.442695, %v744_v63  ;;  %v957_v26 = vmul.f32 1.442695, %v928_v20  ;;  %v904_v27 = vadd.f32 %v875_v59, %v792_v21 }
 0x14c   :  { %v795_v28 = vmul.f32 %v1308_v42, %v1964_v7  ;;  %1123 = vst [vmem:[%s2211_s9 + $0x130] sm:$0xff] %v1002_v55  ;;  %972 = vst [vmem:[%s2211_s9 + $0x48] sm:$0xff] %v1442_v24  ;;  %v743_v60 = vadd.f32 %v1970_v14, %v720_v22  ;;  %v723_v0 = vadd.f32 %v1958_v1, %v611_v23 }
 0x14d   :  { %v610_v30 = vmul.f32 %v1962_v6, %v344_v61  ;;  %v794_v31 = vmul.f32 %v1964_v7, %v586_v46  ;;  %v1444_v32 = vpop.eup %1443  ;;  %1457 = vpow2.f32 %v773_v25  ;;  %v927_v33 = vadd.f32 %v1977_v19, %v904_v27 }
 0x14e   :  { %v907_v34 = vadd.f32 %v890_v29, %v795_v28  ;;  %v1446_v56 = vpop.eup %1445  ;;  %1110 = vst [vmem:[%s2211_s9 + $0xc8] sm:$0xff] %v1444_v32  ;;  %v1005_v36 = vmul.f32 %v1444_v32, %v1442_v24  ;;  %1459 = vpow2.f32 %v957_v26  ;;  %v771_v37 = vmul.f32 1.442695, %v743_v60 }
 0x14f   :  { %v746_v1 = vadd.f32 %v1970_v14, %v723_v0  ;;  %971 = vst [vmem:[%s2211_s9 + $0x40] sm:$0xff] %v1446_v56  ;;  %v955_v6 = vmul.f32 1.442695, %v927_v33  ;;  %v722_v38 = vadd.f32 %v1960_v2, %v610_v30  ;;  %v906_v57 = vadd.f32 %v885_v35, %v794_v31 }
 0x150   :  { %v930_v7 = vadd.f32 %v1977_v19, %v907_v34  ;;  %v1448_v39 = vpop.eup %1447  ;;  %1126 = vst [vmem:[%s2211_s9 + $0x148] sm:$0xff] %v1005_v36  ;;  %1461 = vpow2.f32 %v771_v37 }
 0x151   :  { %v777_v40 = vmul.f32 1.442695, %v746_v1  ;;  %v1450_v41 = vpop.eup %1449  ;;  %1109 = vst [vmem:[%s2211_s9 + $0xc0] sm:$0xff] %v1448_v39  ;;  %v1004_v42 = vmul.f32 %v1448_v39, %v1446_v56  ;;  %1463 = vpow2.f32 %v955_v6  ;;  %v745_v43 = vadd.f32 %v1970_v14, %v722_v38 }
 0x152   :  { %v961_v61 = vmul.f32 1.442695, %v930_v7  ;;  %974 = vst [vmem:[%s2211_s9 + $0x58] sm:$0xff] %v1450_v41  ;;  %v929_v2 = vadd.f32 %v1977_v19, %v906_v57 }
 0x153   :  { %v1452_v44 = vpop.eup %1451  ;;  %1465 = vpow2.f32 %v777_v40  ;;  %1125 = vst [vmem:[%s2211_s9 + $0x140] sm:$0xff] %v1004_v42  ;;  %v775_v14 = vmul.f32 1.442695, %v745_v43 }
 0x154   :  { %v1454_v45 = vpop.eup %1453  ;;  %1112 = vst [vmem:[%s2211_s9 + $0xd8] sm:$0xff] %v1452_v44  ;;  %v1007_v46 = vmul.f32 %v1452_v44, %v1450_v41  ;;  %1467 = vpow2.f32 %v961_v61  ;;  %v959_v48 = vmul.f32 1.442695, %v929_v2 }
 0x155   :  { %v1456_v47 = vpop.eup %1455  ;;  %973 = vst [vmem:[%s2211_s9 + $0x50] sm:$0xff] %v1454_v45  ;;  %1469 = vpow2.f32 %v775_v14 }
 0x156   :  { %1128 = vst [vmem:[%s2211_s9 + $0x158] sm:$0xff] %v1007_v46  ;;  %1111 = vst [vmem:[%s2211_s9 + $0xd0] sm:$0xff] %v1456_v47  ;;  %v1006_v19 = vmul.f32 %v1456_v47, %v1454_v45  ;;  %1471 = vpow2.f32 %v959_v48 }
 0x157   :  { %v1458_v49 = vpop.eup %1457 }
 0x158   :  { %1127 = vst [vmem:[%s2211_s9 + $0x150] sm:$0xff] %v1006_v19  ;;  %v1460_v58 = vpop.eup %1459  ;;  %976 = vst [vmem:[%s2211_s9 + $0x68] sm:$0xff] %v1458_v49 }
 0x159   :  { %1114 = vst [vmem:[%s2211_s9 + $0xe8] sm:$0xff] %v1460_v58  ;;  %v1009_v50 = vmul.f32 %v1460_v58, %v1458_v49 }
 0x15a   :  { %v1462_v52 = vpop.eup %1461 }
 0x15b   :  { %v1464_v53 = vpop.eup %1463  ;;  %1130 = vst [vmem:[%s2211_s9 + $0x168] sm:$0xff] %v1009_v50  ;;  %975 = vst [vmem:[%s2211_s9 + $0x60] sm:$0xff] %v1462_v52 }
 0x15c   :  { %1113 = vst [vmem:[%s2211_s9 + $0xe0] sm:$0xff] %v1464_v53  ;;  %v1008_v54 = vmul.f32 %v1464_v53, %v1462_v52 }
 0x15d   :  { %v1466_v62 = vpop.eup %1465 }
 0x15e   :  { %v1468_v51 = vpop.eup %1467  ;;  %978 = vst [vmem:[%s2211_s9 + $0x78] sm:$0xff] %v1466_v62  ;;  %1129 = vst [vmem:[%s2211_s9 + $0x160] sm:$0xff] %v1008_v54 }
 0x15f   :  { %1116 = vst [vmem:[%s2211_s9 + $0xf8] sm:$0xff] %v1468_v51  ;;  %v1011_v3 = vmul.f32 %v1468_v51, %v1466_v62  ;;  %v1470_v5 = vpop.eup %1469 }
 0x160   :  { %v1472_v8 = vpop.eup %1471  ;;  %977 = vst [vmem:[%s2211_s9 + $0x70] sm:$0xff] %v1470_v5 }
 0x161   :  { %1132 = vst [vmem:[%s2211_s9 + $0x178] sm:$0xff] %v1011_v3  ;;  %1115 = vst [vmem:[%s2211_s9 + $0xf0] sm:$0xff] %v1472_v8  ;;  %v1010_v10 = vmul.f32 %v1472_v8, %v1470_v5 }
 0x163   :  { %1131 = vst [vmem:[%s2211_s9 + $0x170] sm:$0xff] %v1010_v10 }
 0x164   :  { %1033 = vsyncpa [#allocation3], 1 }

</bundles_post_ra>
